<compile_context>
chip_gen: v6e
topology: v6e:2x2x1
jax: 0.10.0
libtpu: 0.0.40
codegen_flags: <defaults>
</compile_context>

<pallas_src>
import math

import jax
import jax.numpy as jnp
from jax.experimental import pallas as pl
from jax.experimental.pallas import tpu as pltpu

# ----------------------- config (synthetic, small) -----------------------
B = 2            # batch
S = 8            # sequence length
D = 32           # hidden_dim
H = 4            # attention heads
HD = D // H      # head dim
F = 64           # ffn dim
L = 2            # encoder layers
VOCAB = 64
PAD_ID = 0
EPS = 1e-5


# ----------------------- fused Pallas kernel -----------------------
def _layernorm(x, g, b):
    mu = jnp.mean(x, axis=-1, keepdims=True)
    var = jnp.mean((x - mu) ** 2, axis=-1, keepdims=True)
    return (x - mu) * jax.lax.rsqrt(var + EPS) * g + b


def _bf16_dot(a, w):
    # MXU matmul with bf16 operands, f32 accumulation.
    return jnp.dot(a.astype(jnp.bfloat16), w.astype(jnp.bfloat16),
                   preferred_element_type=jnp.float32)


def discriminator_kernel(h_ref, bias_ref,
                         wqkv_ref, bqkv_ref, wo_ref, bo_ref,
                         ln1g_ref, ln1b_ref,
                         w1_ref, b1_ref, w2_ref, b2_ref,
                         ln2g_ref, ln2b_ref,
                         fcw_ref, fcb_ref,
                         logit_ref):
    # h_ref: (B*S, D) f32, bias_ref: (B, S) additive key-padding bias (-1e9 on pads)
    h = h_ref[...]                                                     # (B*S, D)

    # hoist: bias broadcast built once, reused for every layer / head
    bias_full = jnp.broadcast_to(bias_ref[...][:, None, :], (B, S, S))  # (B, S, S)
    scale = 1.0 / math.sqrt(HD)

    for li in range(L):                           # static loop over encoder layers
        # ---- self attention (post-LN, nn.TransformerEncoderLayer default) ----
        # fused QKV: one (B*S, D) @ (D, 3D) MXU push
        qkv = _bf16_dot(h, wqkv_ref[li]) + bqkv_ref[li]                # (B*S, 3D)
        q = qkv[:, 0 * D:1 * D].reshape(B, S, D)
        k = qkv[:, 1 * D:2 * D].reshape(B, S, D)
        v = qkv[:, 2 * D:3 * D].reshape(B, S, D)

        attn = None
        for hh in range(H):                       # static loop over heads
            sl = slice(hh * HD, (hh + 1) * HD)
            qh, kh, vh = q[..., sl], k[..., sl], v[..., sl]            # (B, S, HD)
            s = jnp.einsum('bqd,bkd->bqk', qh, kh,
                           preferred_element_type=jnp.float32)         # (B, S, S)
            s = s * scale + bias_full
            s = s - jnp.max(s, axis=-1, keepdims=True)
            p = jnp.exp(s)
            p = p * pl.reciprocal(jnp.sum(p, axis=-1, keepdims=True), approx=True)
            ctx = jnp.einsum('bqk,bkd->bqd', p, vh,
                             preferred_element_type=jnp.float32)       # (B, S, HD)
            # fold the per-head output projection: sum_h ctx_h @ wo[sl,:] == concat(ctx) @ wo
            part = _bf16_dot(ctx.reshape(B * S, HD), wo_ref[li][sl, :])  # (B*S, D)
            attn = part if attn is None else attn + part
        attn = attn + bo_ref[li]

        h = _layernorm(h + attn, ln1g_ref[li], ln1b_ref[li])

        # ---- feed forward (ReLU) ----
        f = _bf16_dot(h, w1_ref[li]) + b1_ref[li]
        f = jnp.maximum(f, 0.0)
        f = _bf16_dot(f, w2_ref[li]) + b2_ref[li]

        h = _layernorm(h + f, ln2g_ref[li], ln2b_ref[li])

    # ---- fc_out head on the [CLS] token, fused into the same kernel ----
    cls = h.reshape(B, S, D)[:, 0, :]                                   # (B, D)
    logit_ref[...] = (jnp.dot(cls, fcw_ref[...],
                              preferred_element_type=jnp.float32) + fcb_ref[...])


# ----------------------- wrapper -----------------------
def _full_spec(shape):
    return pl.BlockSpec(shape, lambda i, _shape=shape: (0,) * len(_shape))


def discriminator_forward(params, x, y=None):
    """x: (B, S) int32 token ids; y: optional (B,) float32 labels."""
    # key-padding mask -> additive attention bias
    x_mask = (x == PAD_ID)
    bias = jnp.where(x_mask, -1e9, 0.0).astype(jnp.float32)             # (B, S)

    # embedding lookup (glue: gather stays in JAX)
    h = (params["tok_emb"][x] + params["pos_emb"][None, :, :]).astype(jnp.float32)
    h2 = h.reshape(B * S, D)                                            # (B*S, D)

    weight_args = [params["wqkv"], params["bqkv"], params["wo"], params["bo"],
                   params["ln1g"], params["ln1b"],
                   params["w1"], params["b1"], params["w2"], params["b2"],
                   params["ln2g"], params["ln2b"],
                   params["fc_w"], params["fc_b"]]

    logit2d = pl.pallas_call(
        discriminator_kernel,
        out_shape=jax.ShapeDtypeStruct((B, 1), jnp.float32),
        grid_spec=pltpu.PrefetchScalarGridSpec(
            num_scalar_prefetch=0,
            grid=(1,),                                 # single fused grid step
            in_specs=[_full_spec((B * S, D)), _full_spec((B, S))]
                     + [_full_spec(w.shape) for w in weight_args],
            out_specs=_full_spec((B, 1)),
        ),
        compiler_params=pltpu.CompilerParams(dimension_semantics=("arbitrary",)),
    )(h2, bias, *weight_args)

    logit = logit2d[:, 0]
    # NOTE: nn.Dropout is defined in __init__ but never applied in forward().
    if y is None:
        return logit

    # BCEWithLogitsLoss (mean reduction), numerically stable (tiny; glue in JAX)
    z = logit
    loss = jnp.mean(jnp.maximum(z, 0.0) - z * y + jnp.log1p(jnp.exp(-jnp.abs(z))))
    return logit, loss


# ----------------------- params -----------------------
def init_params(key):
    def nrm(k, shape, scale=0.02):
        return (scale * jax.random.normal(k, shape)).astype(jnp.float32)

    keys = jax.random.split(key, 3 + L)
    params = {
        "tok_emb": nrm(keys[0], (VOCAB, D)),
        "pos_emb": nrm(keys[1], (S, D)),
        "fc_w": nrm(keys[2], (D, 1)),                 # stored as (in, out) = W.T of nn.Linear
        "fc_b": jnp.zeros((1, 1), jnp.float32),
    }
    wqkv, wo, w1, w2 = [], [], [], []
    for li in range(L):
        k = jax.random.split(keys[3 + li], 6)
        # fused QKV weight (D, 3D) = concat(wq, wk, wv) along the output dim
        wqkv.append(jnp.concatenate(
            [nrm(k[0], (D, D)), nrm(k[1], (D, D)), nrm(k[2], (D, D))], axis=1))
        wo.append(nrm(k[3], (D, D)))
        w1.append(nrm(k[4], (D, F)))
        w2.append(nrm(k[5], (F, D)))
    params.update({
        "wqkv": jnp.stack(wqkv),                          # (L, D, 3D)
        "bqkv": jnp.zeros((L, 1, 3 * D), jnp.float32),
        "wo": jnp.stack(wo),   "bo": jnp.zeros((L, 1, D), jnp.float32),
        "ln1g": jnp.ones((L, 1, D), jnp.float32), "ln1b": jnp.zeros((L, 1, D), jnp.float32),
        "w1": jnp.stack(w1),   "b1": jnp.zeros((L, 1, F), jnp.float32),
        "w2": jnp.stack(w2),   "b2": jnp.zeros((L, 1, D), jnp.float32),
        "ln2g": jnp.ones((L, 1, D), jnp.float32), "ln2b": jnp.zeros((L, 1, D), jnp.float32),
    })
    return params


if __name__ == "__main__":
    key = jax.random.PRNGKey(0)
    pkey, xkey, ykey = jax.random.split(key, 3)

    params = init_params(pkey)

    # deterministic example inputs: token ids in [1, VOCAB), trailing positions padded
    x = jax.random.randint(xkey, (B, S), 1, VOCAB, dtype=jnp.int32)
    x = x.at[:, -2:].set(PAD_ID)                    # exercise the key-padding mask
    y = jax.random.bernoulli(ykey, 0.5, (B,)).astype(jnp.float32)

    logit_only = discriminator_forward(params, x)           # y is None -> logit
    logit, loss = discriminator_forward(params, x, y)       # with labels -> (logit, loss)

    jax.block_until_ready((logit_only, logit, loss))
    assert logit_only.shape == (B,) and logit.shape == (B,) and loss.shape == ()
    print("KERNEL_OK")
</pallas_src>

<mosaic_0001>
module attributes {stable_mosaic.version = 11 : i64} {
  func.func @discriminator_kernel(%arg0: i32, %arg1: memref<16x32xf32, #tpu.memory_space<vmem>>, %arg2: memref<2x8xf32, #tpu.memory_space<vmem>>, %arg3: memref<2x32x96xf32, #tpu.memory_space<vmem>>, %arg4: memref<2x1x96xf32, #tpu.memory_space<vmem>>, %arg5: memref<2x32x32xf32, #tpu.memory_space<vmem>>, %arg6: memref<2x1x32xf32, #tpu.memory_space<vmem>>, %arg7: memref<2x1x32xf32, #tpu.memory_space<vmem>>, %arg8: memref<2x1x32xf32, #tpu.memory_space<vmem>>, %arg9: memref<2x32x64xf32, #tpu.memory_space<vmem>>, %arg10: memref<2x1x64xf32, #tpu.memory_space<vmem>>, %arg11: memref<2x64x32xf32, #tpu.memory_space<vmem>>, %arg12: memref<2x1x32xf32, #tpu.memory_space<vmem>>, %arg13: memref<2x1x32xf32, #tpu.memory_space<vmem>>, %arg14: memref<2x1x32xf32, #tpu.memory_space<vmem>>, %arg15: memref<32x1xf32, #tpu.memory_space<vmem>>, %arg16: memref<1x1xf32, #tpu.memory_space<vmem>>, %arg17: memref<2x1xf32, #tpu.memory_space<vmem>>) attributes {dimension_semantics = [#tpu.dimension_semantics<arbitrary>], iteration_bounds = array<i64: 1>, scalar_prefetch = 0 : i64, scratch_operands = 0 : i64, tpu.core_type = #tpu.core_type<tc>, window_params = [{pipeline_mode = #tpu.pipeline_mode<synchronous>, transform_indices = @transform_0, window_bounds = array<i64: 16, 32>}, {pipeline_mode = #tpu.pipeline_mode<synchronous>, transform_indices = @transform_1, window_bounds = array<i64: 2, 8>}, {pipeline_mode = #tpu.pipeline_mode<synchronous>, transform_indices = @transform_2, window_bounds = array<i64: 2, 32, 96>}, {pipeline_mode = #tpu.pipeline_mode<synchronous>, transform_indices = @transform_3, window_bounds = array<i64: 2, 1, 96>}, {pipeline_mode = #tpu.pipeline_mode<synchronous>, transform_indices = @transform_4, window_bounds = array<i64: 2, 32, 32>}, {pipeline_mode = #tpu.pipeline_mode<synchronous>, transform_indices = @transform_5, window_bounds = array<i64: 2, 1, 32>}, {pipeline_mode = #tpu.pipeline_mode<synchronous>, transform_indices = @transform_6, window_bounds = array<i64: 2, 1, 32>}, {pipeline_mode = #tpu.pipeline_mode<synchronous>, transform_indices = @transform_7, window_bounds = array<i64: 2, 1, 32>}, {pipeline_mode = #tpu.pipeline_mode<synchronous>, transform_indices = @transform_8, window_bounds = array<i64: 2, 32, 64>}, {pipeline_mode = #tpu.pipeline_mode<synchronous>, transform_indices = @transform_9, window_bounds = array<i64: 2, 1, 64>}, {pipeline_mode = #tpu.pipeline_mode<synchronous>, transform_indices = @transform_10, window_bounds = array<i64: 2, 64, 32>}, {pipeline_mode = #tpu.pipeline_mode<synchronous>, transform_indices = @transform_11, window_bounds = array<i64: 2, 1, 32>}, {pipeline_mode = #tpu.pipeline_mode<synchronous>, transform_indices = @transform_12, window_bounds = array<i64: 2, 1, 32>}, {pipeline_mode = #tpu.pipeline_mode<synchronous>, transform_indices = @transform_13, window_bounds = array<i64: 2, 1, 32>}, {pipeline_mode = #tpu.pipeline_mode<synchronous>, transform_indices = @transform_14, window_bounds = array<i64: 32, 1>}, {pipeline_mode = #tpu.pipeline_mode<synchronous>, transform_indices = @transform_15, window_bounds = array<i64: 1, 1>}, {pipeline_mode = #tpu.pipeline_mode<synchronous>, transform_indices = @transform_16, window_bounds = array<i64: 2, 1>}]} {
    %c0 = arith.constant 0 : index
    %c0_0 = arith.constant 0 : index
    %0 = vector.load %arg1[%c0, %c0_0] : memref<16x32xf32, #tpu.memory_space<vmem>>, vector<16x32xf32>
    %c0_1 = arith.constant 0 : index
    %c0_2 = arith.constant 0 : index
    %1 = vector.load %arg2[%c0_1, %c0_2] : memref<2x8xf32, #tpu.memory_space<vmem>>, vector<2x8xf32>
    %2 = vector.shape_cast %1 : vector<2x8xf32> to vector<2x1x8xf32>
    %3 = vector.shape_cast %2 : vector<2x1x8xf32> to vector<2x1x8xf32>
    %4 = vector.broadcast %3 : vector<2x1x8xf32> to vector<2x8x8xf32>
    %c0_3 = arith.constant 0 : index
    %c0_4 = arith.constant 0 : index
    %c0_5 = arith.constant 0 : index
    %5 = vector.load %arg3[%c0_3, %c0_4, %c0_5] : memref<2x32x96xf32, #tpu.memory_space<vmem>>, vector<1x32x96xf32>
    %6 = vector.shape_cast %5 : vector<1x32x96xf32> to vector<32x96xf32>
    %7 = arith.truncf %0 : vector<16x32xf32> to vector<16x32xbf16>
    %8 = arith.truncf %6 : vector<32x96xf32> to vector<32x96xbf16>
    %cst = arith.constant dense<0.000000e+00> : vector<16x96xf32>
    %9 = tpu.matmul %7, %8, %cst {dimension_numbers = #tpu.dot_dimension_numbers<[1], [0], [0], [1], [0, 0, 1, 1], [], []>} : vector<16x32xbf16>, vector<32x96xbf16>, vector<16x96xf32> -> vector<16x96xf32>
    %c0_6 = arith.constant 0 : index
    %c0_7 = arith.constant 0 : index
    %c0_8 = arith.constant 0 : index
    %10 = vector.load %arg4[%c0_6, %c0_7, %c0_8] : memref<2x1x96xf32, #tpu.memory_space<vmem>>, vector<1x1x96xf32>
    %11 = vector.shape_cast %10 : vector<1x1x96xf32> to vector<1x96xf32>
    %12 = vector.broadcast %11 : vector<1x96xf32> to vector<16x96xf32>
    %13 = arith.addf %9, %12 : vector<16x96xf32>
    %14 = vector.extract_strided_slice %13 {offsets = [0, 0], sizes = [16, 32], strides = [1, 1]} : vector<16x96xf32> to vector<16x32xf32>
    %15 = vector.shape_cast %14 : vector<16x32xf32> to vector<2x8x32xf32>
    %16 = vector.extract_strided_slice %13 {offsets = [0, 32], sizes = [16, 32], strides = [1, 1]} : vector<16x96xf32> to vector<16x32xf32>
    %17 = vector.shape_cast %16 : vector<16x32xf32> to vector<2x8x32xf32>
    %18 = vector.extract_strided_slice %13 {offsets = [0, 64], sizes = [16, 32], strides = [1, 1]} : vector<16x96xf32> to vector<16x32xf32>
    %19 = vector.shape_cast %18 : vector<16x32xf32> to vector<2x8x32xf32>
    %20 = vector.extract_strided_slice %15 {offsets = [0, 0, 0], sizes = [2, 8, 8], strides = [1, 1, 1]} : vector<2x8x32xf32> to vector<2x8x8xf32>
    %21 = vector.extract_strided_slice %17 {offsets = [0, 0, 0], sizes = [2, 8, 8], strides = [1, 1, 1]} : vector<2x8x32xf32> to vector<2x8x8xf32>
    %22 = vector.extract_strided_slice %19 {offsets = [0, 0, 0], sizes = [2, 8, 8], strides = [1, 1, 1]} : vector<2x8x32xf32> to vector<2x8x8xf32>
    "tpu.trace_start"() <{level = 10 : i32, message = "bqd,bkd->bqk"}> : () -> ()
    %cst_9 = arith.constant dense<0.000000e+00> : vector<2x8x8xf32>
    %23 = tpu.matmul %20, %21, %cst_9 {dimension_numbers = #tpu.dot_dimension_numbers<[2], [2], [1], [1], [0, 0, 0, 1, 1, 1], [0], [0]>} : vector<2x8x8xf32>, vector<2x8x8xf32>, vector<2x8x8xf32> -> vector<2x8x8xf32>
    "tpu.trace_stop"() : () -> ()
    %cst_10 = arith.constant 0.353553385 : f32
    %24 = vector.broadcast %cst_10 : f32 to vector<2x8x8xf32>
    %25 = arith.mulf %23, %24 : vector<2x8x8xf32>
    %26 = arith.addf %25, %4 : vector<2x8x8xf32>
    %cst_11 = arith.constant dense<0xFF800000> : vector<2x8xf32>
    %27 = vector.multi_reduction <maximumf>, %26, %cst_11 [2] : vector<2x8x8xf32> to vector<2x8xf32>
    %28 = vector.shape_cast %27 : vector<2x8xf32> to vector<2x8x1xf32>
    %29 = vector.broadcast %28 : vector<2x8x1xf32> to vector<2x8x8xf32>
    %30 = arith.subf %26, %29 : vector<2x8x8xf32>
    %31 = math.exp %30 : vector<2x8x8xf32>
    %cst_12 = arith.constant dense<0.000000e+00> : vector<2x8xf32>
    %32 = vector.multi_reduction <add>, %31, %cst_12 [2] : vector<2x8x8xf32> to vector<2x8xf32>
    %33 = vector.shape_cast %32 : vector<2x8xf32> to vector<2x8x1xf32>
    %34 = tpu.reciprocal %33 {approx = true} : vector<2x8x1xf32> -> vector<2x8x1xf32>
    %35 = vector.broadcast %34 : vector<2x8x1xf32> to vector<2x8x8xf32>
    %36 = arith.mulf %31, %35 : vector<2x8x8xf32>
    "tpu.trace_start"() <{level = 10 : i32, message = "bqk,bkd->bqd"}> : () -> ()
    %cst_13 = arith.constant dense<0.000000e+00> : vector<2x8x8xf32>
    %37 = tpu.matmul %36, %22, %cst_13 {dimension_numbers = #tpu.dot_dimension_numbers<[2], [1], [1], [2], [0, 0, 0, 1, 1, 2], [0], [0]>} : vector<2x8x8xf32>, vector<2x8x8xf32>, vector<2x8x8xf32> -> vector<2x8x8xf32>
    "tpu.trace_stop"() : () -> ()
    %38 = vector.shape_cast %37 : vector<2x8x8xf32> to vector<16x8xf32>
    %c0_14 = arith.constant 0 : index
    %c0_15 = arith.constant 0 : index
    %c0_16 = arith.constant 0 : index
    %39 = vector.load %arg5[%c0_14, %c0_15, %c0_16] : memref<2x32x32xf32, #tpu.memory_space<vmem>>, vector<1x32x32xf32>
    %40 = vector.shape_cast %39 : vector<1x32x32xf32> to vector<32x32xf32>
    %41 = vector.extract_strided_slice %40 {offsets = [0, 0], sizes = [8, 32], strides = [1, 1]} : vector<32x32xf32> to vector<8x32xf32>
    %42 = arith.truncf %38 : vector<16x8xf32> to vector<16x8xbf16>
    %43 = arith.truncf %41 : vector<8x32xf32> to vector<8x32xbf16>
    %cst_17 = arith.constant dense<0.000000e+00> : vector<16x32xf32>
    %44 = tpu.matmul %42, %43, %cst_17 {dimension_numbers = #tpu.dot_dimension_numbers<[1], [0], [0], [1], [0, 0, 1, 1], [], []>} : vector<16x8xbf16>, vector<8x32xbf16>, vector<16x32xf32> -> vector<16x32xf32>
    %45 = vector.extract_strided_slice %15 {offsets = [0, 0, 8], sizes = [2, 8, 8], strides = [1, 1, 1]} : vector<2x8x32xf32> to vector<2x8x8xf32>
    %46 = vector.extract_strided_slice %17 {offsets = [0, 0, 8], sizes = [2, 8, 8], strides = [1, 1, 1]} : vector<2x8x32xf32> to vector<2x8x8xf32>
    %47 = vector.extract_strided_slice %19 {offsets = [0, 0, 8], sizes = [2, 8, 8], strides = [1, 1, 1]} : vector<2x8x32xf32> to vector<2x8x8xf32>
    "tpu.trace_start"() <{level = 10 : i32, message = "bqd,bkd->bqk"}> : () -> ()
    %cst_18 = arith.constant dense<0.000000e+00> : vector<2x8x8xf32>
    %48 = tpu.matmul %45, %46, %cst_18 {dimension_numbers = #tpu.dot_dimension_numbers<[2], [2], [1], [1], [0, 0, 0, 1, 1, 1], [0], [0]>} : vector<2x8x8xf32>, vector<2x8x8xf32>, vector<2x8x8xf32> -> vector<2x8x8xf32>
    "tpu.trace_stop"() : () -> ()
    %cst_19 = arith.constant 0.353553385 : f32
    %49 = vector.broadcast %cst_19 : f32 to vector<2x8x8xf32>
    %50 = arith.mulf %48, %49 : vector<2x8x8xf32>
    %51 = arith.addf %50, %4 : vector<2x8x8xf32>
    %cst_20 = arith.constant dense<0xFF800000> : vector<2x8xf32>
    %52 = vector.multi_reduction <maximumf>, %51, %cst_20 [2] : vector<2x8x8xf32> to vector<2x8xf32>
    %53 = vector.shape_cast %52 : vector<2x8xf32> to vector<2x8x1xf32>
    %54 = vector.broadcast %53 : vector<2x8x1xf32> to vector<2x8x8xf32>
    %55 = arith.subf %51, %54 : vector<2x8x8xf32>
    %56 = math.exp %55 : vector<2x8x8xf32>
    %cst_21 = arith.constant dense<0.000000e+00> : vector<2x8xf32>
    %57 = vector.multi_reduction <add>, %56, %cst_21 [2] : vector<2x8x8xf32> to vector<2x8xf32>
    %58 = vector.shape_cast %57 : vector<2x8xf32> to vector<2x8x1xf32>
    %59 = tpu.reciprocal %58 {approx = true} : vector<2x8x1xf32> -> vector<2x8x1xf32>
    %60 = vector.broadcast %59 : vector<2x8x1xf32> to vector<2x8x8xf32>
    %61 = arith.mulf %56, %60 : vector<2x8x8xf32>
    "tpu.trace_start"() <{level = 10 : i32, message = "bqk,bkd->bqd"}> : () -> ()
    %cst_22 = arith.constant dense<0.000000e+00> : vector<2x8x8xf32>
    %62 = tpu.matmul %61, %47, %cst_22 {dimension_numbers = #tpu.dot_dimension_numbers<[2], [1], [1], [2], [0, 0, 0, 1, 1, 2], [0], [0]>} : vector<2x8x8xf32>, vector<2x8x8xf32>, vector<2x8x8xf32> -> vector<2x8x8xf32>
    "tpu.trace_stop"() : () -> ()
    %63 = vector.shape_cast %62 : vector<2x8x8xf32> to vector<16x8xf32>
    %c0_23 = arith.constant 0 : index
    %c0_24 = arith.constant 0 : index
    %c0_25 = arith.constant 0 : index
    %64 = vector.load %arg5[%c0_23, %c0_24, %c0_25] : memref<2x32x32xf32, #tpu.memory_space<vmem>>, vector<1x32x32xf32>
    %65 = vector.shape_cast %64 : vector<1x32x32xf32> to vector<32x32xf32>
    %66 = vector.extract_strided_slice %65 {offsets = [8, 0], sizes = [8, 32], strides = [1, 1]} : vector<32x32xf32> to vector<8x32xf32>
    %67 = arith.truncf %63 : vector<16x8xf32> to vector<16x8xbf16>
    %68 = arith.truncf %66 : vector<8x32xf32> to vector<8x32xbf16>
    %cst_26 = arith.constant dense<0.000000e+00> : vector<16x32xf32>
    %69 = tpu.matmul %67, %68, %cst_26 {dimension_numbers = #tpu.dot_dimension_numbers<[1], [0], [0], [1], [0, 0, 1, 1], [], []>} : vector<16x8xbf16>, vector<8x32xbf16>, vector<16x32xf32> -> vector<16x32xf32>
    %70 = arith.addf %44, %69 : vector<16x32xf32>
    %71 = vector.extract_strided_slice %15 {offsets = [0, 0, 16], sizes = [2, 8, 8], strides = [1, 1, 1]} : vector<2x8x32xf32> to vector<2x8x8xf32>
    %72 = vector.extract_strided_slice %17 {offsets = [0, 0, 16], sizes = [2, 8, 8], strides = [1, 1, 1]} : vector<2x8x32xf32> to vector<2x8x8xf32>
    %73 = vector.extract_strided_slice %19 {offsets = [0, 0, 16], sizes = [2, 8, 8], strides = [1, 1, 1]} : vector<2x8x32xf32> to vector<2x8x8xf32>
    "tpu.trace_start"() <{level = 10 : i32, message = "bqd,bkd->bqk"}> : () -> ()
    %cst_27 = arith.constant dense<0.000000e+00> : vector<2x8x8xf32>
    %74 = tpu.matmul %71, %72, %cst_27 {dimension_numbers = #tpu.dot_dimension_numbers<[2], [2], [1], [1], [0, 0, 0, 1, 1, 1], [0], [0]>} : vector<2x8x8xf32>, vector<2x8x8xf32>, vector<2x8x8xf32> -> vector<2x8x8xf32>
    "tpu.trace_stop"() : () -> ()
    %cst_28 = arith.constant 0.353553385 : f32
    %75 = vector.broadcast %cst_28 : f32 to vector<2x8x8xf32>
    %76 = arith.mulf %74, %75 : vector<2x8x8xf32>
    %77 = arith.addf %76, %4 : vector<2x8x8xf32>
    %cst_29 = arith.constant dense<0xFF800000> : vector<2x8xf32>
    %78 = vector.multi_reduction <maximumf>, %77, %cst_29 [2] : vector<2x8x8xf32> to vector<2x8xf32>
    %79 = vector.shape_cast %78 : vector<2x8xf32> to vector<2x8x1xf32>
    %80 = vector.broadcast %79 : vector<2x8x1xf32> to vector<2x8x8xf32>
    %81 = arith.subf %77, %80 : vector<2x8x8xf32>
    %82 = math.exp %81 : vector<2x8x8xf32>
    %cst_30 = arith.constant dense<0.000000e+00> : vector<2x8xf32>
    %83 = vector.multi_reduction <add>, %82, %cst_30 [2] : vector<2x8x8xf32> to vector<2x8xf32>
    %84 = vector.shape_cast %83 : vector<2x8xf32> to vector<2x8x1xf32>
    %85 = tpu.reciprocal %84 {approx = true} : vector<2x8x1xf32> -> vector<2x8x1xf32>
    %86 = vector.broadcast %85 : vector<2x8x1xf32> to vector<2x8x8xf32>
    %87 = arith.mulf %82, %86 : vector<2x8x8xf32>
    "tpu.trace_start"() <{level = 10 : i32, message = "bqk,bkd->bqd"}> : () -> ()
    %cst_31 = arith.constant dense<0.000000e+00> : vector<2x8x8xf32>
    %88 = tpu.matmul %87, %73, %cst_31 {dimension_numbers = #tpu.dot_dimension_numbers<[2], [1], [1], [2], [0, 0, 0, 1, 1, 2], [0], [0]>} : vector<2x8x8xf32>, vector<2x8x8xf32>, vector<2x8x8xf32> -> vector<2x8x8xf32>
    "tpu.trace_stop"() : () -> ()
    %89 = vector.shape_cast %88 : vector<2x8x8xf32> to vector<16x8xf32>
    %c0_32 = arith.constant 0 : index
    %c0_33 = arith.constant 0 : index
    %c0_34 = arith.constant 0 : index
    %90 = vector.load %arg5[%c0_32, %c0_33, %c0_34] : memref<2x32x32xf32, #tpu.memory_space<vmem>>, vector<1x32x32xf32>
    %91 = vector.shape_cast %90 : vector<1x32x32xf32> to vector<32x32xf32>
    %92 = vector.extract_strided_slice %91 {offsets = [16, 0], sizes = [8, 32], strides = [1, 1]} : vector<32x32xf32> to vector<8x32xf32>
    %93 = arith.truncf %89 : vector<16x8xf32> to vector<16x8xbf16>
    %94 = arith.truncf %92 : vector<8x32xf32> to vector<8x32xbf16>
    %cst_35 = arith.constant dense<0.000000e+00> : vector<16x32xf32>
    %95 = tpu.matmul %93, %94, %cst_35 {dimension_numbers = #tpu.dot_dimension_numbers<[1], [0], [0], [1], [0, 0, 1, 1], [], []>} : vector<16x8xbf16>, vector<8x32xbf16>, vector<16x32xf32> -> vector<16x32xf32>
    %96 = arith.addf %70, %95 : vector<16x32xf32>
    %97 = vector.extract_strided_slice %15 {offsets = [0, 0, 24], sizes = [2, 8, 8], strides = [1, 1, 1]} : vector<2x8x32xf32> to vector<2x8x8xf32>
    %98 = vector.extract_strided_slice %17 {offsets = [0, 0, 24], sizes = [2, 8, 8], strides = [1, 1, 1]} : vector<2x8x32xf32> to vector<2x8x8xf32>
    %99 = vector.extract_strided_slice %19 {offsets = [0, 0, 24], sizes = [2, 8, 8], strides = [1, 1, 1]} : vector<2x8x32xf32> to vector<2x8x8xf32>
    "tpu.trace_start"() <{level = 10 : i32, message = "bqd,bkd->bqk"}> : () -> ()
    %cst_36 = arith.constant dense<0.000000e+00> : vector<2x8x8xf32>
    %100 = tpu.matmul %97, %98, %cst_36 {dimension_numbers = #tpu.dot_dimension_numbers<[2], [2], [1], [1], [0, 0, 0, 1, 1, 1], [0], [0]>} : vector<2x8x8xf32>, vector<2x8x8xf32>, vector<2x8x8xf32> -> vector<2x8x8xf32>
    "tpu.trace_stop"() : () -> ()
    %cst_37 = arith.constant 0.353553385 : f32
    %101 = vector.broadcast %cst_37 : f32 to vector<2x8x8xf32>
    %102 = arith.mulf %100, %101 : vector<2x8x8xf32>
    %103 = arith.addf %102, %4 : vector<2x8x8xf32>
    %cst_38 = arith.constant dense<0xFF800000> : vector<2x8xf32>
    %104 = vector.multi_reduction <maximumf>, %103, %cst_38 [2] : vector<2x8x8xf32> to vector<2x8xf32>
    %105 = vector.shape_cast %104 : vector<2x8xf32> to vector<2x8x1xf32>
    %106 = vector.broadcast %105 : vector<2x8x1xf32> to vector<2x8x8xf32>
    %107 = arith.subf %103, %106 : vector<2x8x8xf32>
    %108 = math.exp %107 : vector<2x8x8xf32>
    %cst_39 = arith.constant dense<0.000000e+00> : vector<2x8xf32>
    %109 = vector.multi_reduction <add>, %108, %cst_39 [2] : vector<2x8x8xf32> to vector<2x8xf32>
    %110 = vector.shape_cast %109 : vector<2x8xf32> to vector<2x8x1xf32>
    %111 = tpu.reciprocal %110 {approx = true} : vector<2x8x1xf32> -> vector<2x8x1xf32>
    %112 = vector.broadcast %111 : vector<2x8x1xf32> to vector<2x8x8xf32>
    %113 = arith.mulf %108, %112 : vector<2x8x8xf32>
    "tpu.trace_start"() <{level = 10 : i32, message = "bqk,bkd->bqd"}> : () -> ()
    %cst_40 = arith.constant dense<0.000000e+00> : vector<2x8x8xf32>
    %114 = tpu.matmul %113, %99, %cst_40 {dimension_numbers = #tpu.dot_dimension_numbers<[2], [1], [1], [2], [0, 0, 0, 1, 1, 2], [0], [0]>} : vector<2x8x8xf32>, vector<2x8x8xf32>, vector<2x8x8xf32> -> vector<2x8x8xf32>
    "tpu.trace_stop"() : () -> ()
    %115 = vector.shape_cast %114 : vector<2x8x8xf32> to vector<16x8xf32>
    %c0_41 = arith.constant 0 : index
    %c0_42 = arith.constant 0 : index
    %c0_43 = arith.constant 0 : index
    %116 = vector.load %arg5[%c0_41, %c0_42, %c0_43] : memref<2x32x32xf32, #tpu.memory_space<vmem>>, vector<1x32x32xf32>
    %117 = vector.shape_cast %116 : vector<1x32x32xf32> to vector<32x32xf32>
    %118 = vector.extract_strided_slice %117 {offsets = [24, 0], sizes = [8, 32], strides = [1, 1]} : vector<32x32xf32> to vector<8x32xf32>
    %119 = arith.truncf %115 : vector<16x8xf32> to vector<16x8xbf16>
    %120 = arith.truncf %118 : vector<8x32xf32> to vector<8x32xbf16>
    %cst_44 = arith.constant dense<0.000000e+00> : vector<16x32xf32>
    %121 = tpu.matmul %119, %120, %cst_44 {dimension_numbers = #tpu.dot_dimension_numbers<[1], [0], [0], [1], [0, 0, 1, 1], [], []>} : vector<16x8xbf16>, vector<8x32xbf16>, vector<16x32xf32> -> vector<16x32xf32>
    %122 = arith.addf %96, %121 : vector<16x32xf32>
    %c0_45 = arith.constant 0 : index
    %c0_46 = arith.constant 0 : index
    %c0_47 = arith.constant 0 : index
    %123 = vector.load %arg6[%c0_45, %c0_46, %c0_47] : memref<2x1x32xf32, #tpu.memory_space<vmem>>, vector<1x1x32xf32>
    %124 = vector.shape_cast %123 : vector<1x1x32xf32> to vector<1x32xf32>
    %125 = vector.broadcast %124 : vector<1x32xf32> to vector<16x32xf32>
    %126 = arith.addf %122, %125 : vector<16x32xf32>
    %127 = arith.addf %0, %126 : vector<16x32xf32>
    %c0_48 = arith.constant 0 : index
    %c0_49 = arith.constant 0 : index
    %c0_50 = arith.constant 0 : index
    %128 = vector.load %arg7[%c0_48, %c0_49, %c0_50] : memref<2x1x32xf32, #tpu.memory_space<vmem>>, vector<1x1x32xf32>
    %129 = vector.shape_cast %128 : vector<1x1x32xf32> to vector<1x32xf32>
    %c0_51 = arith.constant 0 : index
    %c0_52 = arith.constant 0 : index
    %c0_53 = arith.constant 0 : index
    %130 = vector.load %arg8[%c0_51, %c0_52, %c0_53] : memref<2x1x32xf32, #tpu.memory_space<vmem>>, vector<1x1x32xf32>
    %131 = vector.shape_cast %130 : vector<1x1x32xf32> to vector<1x32xf32>
    %cst_54 = arith.constant dense<0.000000e+00> : vector<16xf32>
    %132 = vector.multi_reduction <add>, %127, %cst_54 [1] : vector<16x32xf32> to vector<16xf32>
    %133 = vector.shape_cast %132 : vector<16xf32> to vector<16x1xf32>
    %cst_55 = arith.constant 3.200000e+01 : f32
    %134 = vector.broadcast %cst_55 : f32 to vector<16x1xf32>
    %135 = arith.divf %133, %134 : vector<16x1xf32>
    %136 = vector.broadcast %135 : vector<16x1xf32> to vector<16x32xf32>
    %137 = arith.subf %127, %136 : vector<16x32xf32>
    %138 = arith.mulf %137, %137 : vector<16x32xf32>
    %cst_56 = arith.constant dense<0.000000e+00> : vector<16xf32>
    %139 = vector.multi_reduction <add>, %138, %cst_56 [1] : vector<16x32xf32> to vector<16xf32>
    %140 = vector.shape_cast %139 : vector<16xf32> to vector<16x1xf32>
    %cst_57 = arith.constant 3.200000e+01 : f32
    %141 = vector.broadcast %cst_57 : f32 to vector<16x1xf32>
    %142 = arith.divf %140, %141 : vector<16x1xf32>
    %143 = vector.broadcast %135 : vector<16x1xf32> to vector<16x32xf32>
    %144 = arith.subf %127, %143 : vector<16x32xf32>
    %cst_58 = arith.constant 9.99999974E-6 : f32
    %145 = vector.broadcast %cst_58 : f32 to vector<16x1xf32>
    %146 = arith.addf %142, %145 : vector<16x1xf32>
    %147 = math.rsqrt %146 : vector<16x1xf32>
    %148 = vector.broadcast %147 : vector<16x1xf32> to vector<16x32xf32>
    %149 = arith.mulf %144, %148 : vector<16x32xf32>
    %150 = vector.broadcast %129 : vector<1x32xf32> to vector<16x32xf32>
    %151 = arith.mulf %149, %150 : vector<16x32xf32>
    %152 = vector.broadcast %131 : vector<1x32xf32> to vector<16x32xf32>
    %153 = arith.addf %151, %152 : vector<16x32xf32>
    %c0_59 = arith.constant 0 : index
    %c0_60 = arith.constant 0 : index
    %c0_61 = arith.constant 0 : index
    %154 = vector.load %arg9[%c0_59, %c0_60, %c0_61] : memref<2x32x64xf32, #tpu.memory_space<vmem>>, vector<1x32x64xf32>
    %155 = vector.shape_cast %154 : vector<1x32x64xf32> to vector<32x64xf32>
    %156 = arith.truncf %153 : vector<16x32xf32> to vector<16x32xbf16>
    %157 = arith.truncf %155 : vector<32x64xf32> to vector<32x64xbf16>
    %cst_62 = arith.constant dense<0.000000e+00> : vector<16x64xf32>
    %158 = tpu.matmul %156, %157, %cst_62 {dimension_numbers = #tpu.dot_dimension_numbers<[1], [0], [0], [1], [0, 0, 1, 1], [], []>} : vector<16x32xbf16>, vector<32x64xbf16>, vector<16x64xf32> -> vector<16x64xf32>
    %c0_63 = arith.constant 0 : index
    %c0_64 = arith.constant 0 : index
    %c0_65 = arith.constant 0 : index
    %159 = vector.load %arg10[%c0_63, %c0_64, %c0_65] : memref<2x1x64xf32, #tpu.memory_space<vmem>>, vector<1x1x64xf32>
    %160 = vector.shape_cast %159 : vector<1x1x64xf32> to vector<1x64xf32>
    %161 = vector.broadcast %160 : vector<1x64xf32> to vector<16x64xf32>
    %162 = arith.addf %158, %161 : vector<16x64xf32>
    %cst_66 = arith.constant 0.000000e+00 : f32
    %163 = vector.broadcast %cst_66 : f32 to vector<16x64xf32>
    %164 = arith.maximumf %162, %163 : vector<16x64xf32>
    %c0_67 = arith.constant 0 : index
    %c0_68 = arith.constant 0 : index
    %c0_69 = arith.constant 0 : index
    %165 = vector.load %arg11[%c0_67, %c0_68, %c0_69] : memref<2x64x32xf32, #tpu.memory_space<vmem>>, vector<1x64x32xf32>
    %166 = vector.shape_cast %165 : vector<1x64x32xf32> to vector<64x32xf32>
    %167 = arith.truncf %164 : vector<16x64xf32> to vector<16x64xbf16>
    %168 = arith.truncf %166 : vector<64x32xf32> to vector<64x32xbf16>
    %cst_70 = arith.constant dense<0.000000e+00> : vector<16x32xf32>
    %169 = tpu.matmul %167, %168, %cst_70 {dimension_numbers = #tpu.dot_dimension_numbers<[1], [0], [0], [1], [0, 0, 1, 1], [], []>} : vector<16x64xbf16>, vector<64x32xbf16>, vector<16x32xf32> -> vector<16x32xf32>
    %c0_71 = arith.constant 0 : index
    %c0_72 = arith.constant 0 : index
    %c0_73 = arith.constant 0 : index
    %170 = vector.load %arg12[%c0_71, %c0_72, %c0_73] : memref<2x1x32xf32, #tpu.memory_space<vmem>>, vector<1x1x32xf32>
    %171 = vector.shape_cast %170 : vector<1x1x32xf32> to vector<1x32xf32>
    %172 = vector.broadcast %171 : vector<1x32xf32> to vector<16x32xf32>
    %173 = arith.addf %169, %172 : vector<16x32xf32>
    %174 = arith.addf %153, %173 : vector<16x32xf32>
    %c0_74 = arith.constant 0 : index
    %c0_75 = arith.constant 0 : index
    %c0_76 = arith.constant 0 : index
    %175 = vector.load %arg13[%c0_74, %c0_75, %c0_76] : memref<2x1x32xf32, #tpu.memory_space<vmem>>, vector<1x1x32xf32>
    %176 = vector.shape_cast %175 : vector<1x1x32xf32> to vector<1x32xf32>
    %c0_77 = arith.constant 0 : index
    %c0_78 = arith.constant 0 : index
    %c0_79 = arith.constant 0 : index
    %177 = vector.load %arg14[%c0_77, %c0_78, %c0_79] : memref<2x1x32xf32, #tpu.memory_space<vmem>>, vector<1x1x32xf32>
    %178 = vector.shape_cast %177 : vector<1x1x32xf32> to vector<1x32xf32>
    %cst_80 = arith.constant dense<0.000000e+00> : vector<16xf32>
    %179 = vector.multi_reduction <add>, %174, %cst_80 [1] : vector<16x32xf32> to vector<16xf32>
    %180 = vector.shape_cast %179 : vector<16xf32> to vector<16x1xf32>
    %cst_81 = arith.constant 3.200000e+01 : f32
    %181 = vector.broadcast %cst_81 : f32 to vector<16x1xf32>
    %182 = arith.divf %180, %181 : vector<16x1xf32>
    %183 = vector.broadcast %182 : vector<16x1xf32> to vector<16x32xf32>
    %184 = arith.subf %174, %183 : vector<16x32xf32>
    %185 = arith.mulf %184, %184 : vector<16x32xf32>
    %cst_82 = arith.constant dense<0.000000e+00> : vector<16xf32>
    %186 = vector.multi_reduction <add>, %185, %cst_82 [1] : vector<16x32xf32> to vector<16xf32>
    %187 = vector.shape_cast %186 : vector<16xf32> to vector<16x1xf32>
    %cst_83 = arith.constant 3.200000e+01 : f32
    %188 = vector.broadcast %cst_83 : f32 to vector<16x1xf32>
    %189 = arith.divf %187, %188 : vector<16x1xf32>
    %190 = vector.broadcast %182 : vector<16x1xf32> to vector<16x32xf32>
    %191 = arith.subf %174, %190 : vector<16x32xf32>
    %cst_84 = arith.constant 9.99999974E-6 : f32
    %192 = vector.broadcast %cst_84 : f32 to vector<16x1xf32>
    %193 = arith.addf %189, %192 : vector<16x1xf32>
    %194 = math.rsqrt %193 : vector<16x1xf32>
    %195 = vector.broadcast %194 : vector<16x1xf32> to vector<16x32xf32>
    %196 = arith.mulf %191, %195 : vector<16x32xf32>
    %197 = vector.broadcast %176 : vector<1x32xf32> to vector<16x32xf32>
    %198 = arith.mulf %196, %197 : vector<16x32xf32>
    %199 = vector.broadcast %178 : vector<1x32xf32> to vector<16x32xf32>
    %200 = arith.addf %198, %199 : vector<16x32xf32>
    %c1 = arith.constant 1 : index
    %c0_85 = arith.constant 0 : index
    %c0_86 = arith.constant 0 : index
    %201 = vector.load %arg3[%c1, %c0_85, %c0_86] : memref<2x32x96xf32, #tpu.memory_space<vmem>>, vector<1x32x96xf32>
    %202 = vector.shape_cast %201 : vector<1x32x96xf32> to vector<32x96xf32>
    %203 = arith.truncf %200 : vector<16x32xf32> to vector<16x32xbf16>
    %204 = arith.truncf %202 : vector<32x96xf32> to vector<32x96xbf16>
    %cst_87 = arith.constant dense<0.000000e+00> : vector<16x96xf32>
    %205 = tpu.matmul %203, %204, %cst_87 {dimension_numbers = #tpu.dot_dimension_numbers<[1], [0], [0], [1], [0, 0, 1, 1], [], []>} : vector<16x32xbf16>, vector<32x96xbf16>, vector<16x96xf32> -> vector<16x96xf32>
    %c1_88 = arith.constant 1 : index
    %c0_89 = arith.constant 0 : index
    %c0_90 = arith.constant 0 : index
    %206 = vector.load %arg4[%c1_88, %c0_89, %c0_90] : memref<2x1x96xf32, #tpu.memory_space<vmem>>, vector<1x1x96xf32>
    %207 = vector.shape_cast %206 : vector<1x1x96xf32> to vector<1x96xf32>
    %208 = vector.broadcast %207 : vector<1x96xf32> to vector<16x96xf32>
    %209 = arith.addf %205, %208 : vector<16x96xf32>
    %210 = vector.extract_strided_slice %209 {offsets = [0, 0], sizes = [16, 32], strides = [1, 1]} : vector<16x96xf32> to vector<16x32xf32>
    %211 = vector.shape_cast %210 : vector<16x32xf32> to vector<2x8x32xf32>
    %212 = vector.extract_strided_slice %209 {offsets = [0, 32], sizes = [16, 32], strides = [1, 1]} : vector<16x96xf32> to vector<16x32xf32>
    %213 = vector.shape_cast %212 : vector<16x32xf32> to vector<2x8x32xf32>
    %214 = vector.extract_strided_slice %209 {offsets = [0, 64], sizes = [16, 32], strides = [1, 1]} : vector<16x96xf32> to vector<16x32xf32>
    %215 = vector.shape_cast %214 : vector<16x32xf32> to vector<2x8x32xf32>
    %216 = vector.extract_strided_slice %211 {offsets = [0, 0, 0], sizes = [2, 8, 8], strides = [1, 1, 1]} : vector<2x8x32xf32> to vector<2x8x8xf32>
    %217 = vector.extract_strided_slice %213 {offsets = [0, 0, 0], sizes = [2, 8, 8], strides = [1, 1, 1]} : vector<2x8x32xf32> to vector<2x8x8xf32>
    %218 = vector.extract_strided_slice %215 {offsets = [0, 0, 0], sizes = [2, 8, 8], strides = [1, 1, 1]} : vector<2x8x32xf32> to vector<2x8x8xf32>
    "tpu.trace_start"() <{level = 10 : i32, message = "bqd,bkd->bqk"}> : () -> ()
    %cst_91 = arith.constant dense<0.000000e+00> : vector<2x8x8xf32>
    %219 = tpu.matmul %216, %217, %cst_91 {dimension_numbers = #tpu.dot_dimension_numbers<[2], [2], [1], [1], [0, 0, 0, 1, 1, 1], [0], [0]>} : vector<2x8x8xf32>, vector<2x8x8xf32>, vector<2x8x8xf32> -> vector<2x8x8xf32>
    "tpu.trace_stop"() : () -> ()
    %cst_92 = arith.constant 0.353553385 : f32
    %220 = vector.broadcast %cst_92 : f32 to vector<2x8x8xf32>
    %221 = arith.mulf %219, %220 : vector<2x8x8xf32>
    %222 = arith.addf %221, %4 : vector<2x8x8xf32>
    %cst_93 = arith.constant dense<0xFF800000> : vector<2x8xf32>
    %223 = vector.multi_reduction <maximumf>, %222, %cst_93 [2] : vector<2x8x8xf32> to vector<2x8xf32>
    %224 = vector.shape_cast %223 : vector<2x8xf32> to vector<2x8x1xf32>
    %225 = vector.broadcast %224 : vector<2x8x1xf32> to vector<2x8x8xf32>
    %226 = arith.subf %222, %225 : vector<2x8x8xf32>
    %227 = math.exp %226 : vector<2x8x8xf32>
    %cst_94 = arith.constant dense<0.000000e+00> : vector<2x8xf32>
    %228 = vector.multi_reduction <add>, %227, %cst_94 [2] : vector<2x8x8xf32> to vector<2x8xf32>
    %229 = vector.shape_cast %228 : vector<2x8xf32> to vector<2x8x1xf32>
    %230 = tpu.reciprocal %229 {approx = true} : vector<2x8x1xf32> -> vector<2x8x1xf32>
    %231 = vector.broadcast %230 : vector<2x8x1xf32> to vector<2x8x8xf32>
    %232 = arith.mulf %227, %231 : vector<2x8x8xf32>
    "tpu.trace_start"() <{level = 10 : i32, message = "bqk,bkd->bqd"}> : () -> ()
    %cst_95 = arith.constant dense<0.000000e+00> : vector<2x8x8xf32>
    %233 = tpu.matmul %232, %218, %cst_95 {dimension_numbers = #tpu.dot_dimension_numbers<[2], [1], [1], [2], [0, 0, 0, 1, 1, 2], [0], [0]>} : vector<2x8x8xf32>, vector<2x8x8xf32>, vector<2x8x8xf32> -> vector<2x8x8xf32>
    "tpu.trace_stop"() : () -> ()
    %234 = vector.shape_cast %233 : vector<2x8x8xf32> to vector<16x8xf32>
    %c1_96 = arith.constant 1 : index
    %c0_97 = arith.constant 0 : index
    %c0_98 = arith.constant 0 : index
    %235 = vector.load %arg5[%c1_96, %c0_97, %c0_98] : memref<2x32x32xf32, #tpu.memory_space<vmem>>, vector<1x32x32xf32>
    %236 = vector.shape_cast %235 : vector<1x32x32xf32> to vector<32x32xf32>
    %237 = vector.extract_strided_slice %236 {offsets = [0, 0], sizes = [8, 32], strides = [1, 1]} : vector<32x32xf32> to vector<8x32xf32>
    %238 = arith.truncf %234 : vector<16x8xf32> to vector<16x8xbf16>
    %239 = arith.truncf %237 : vector<8x32xf32> to vector<8x32xbf16>
    %cst_99 = arith.constant dense<0.000000e+00> : vector<16x32xf32>
    %240 = tpu.matmul %238, %239, %cst_99 {dimension_numbers = #tpu.dot_dimension_numbers<[1], [0], [0], [1], [0, 0, 1, 1], [], []>} : vector<16x8xbf16>, vector<8x32xbf16>, vector<16x32xf32> -> vector<16x32xf32>
    %241 = vector.extract_strided_slice %211 {offsets = [0, 0, 8], sizes = [2, 8, 8], strides = [1, 1, 1]} : vector<2x8x32xf32> to vector<2x8x8xf32>
    %242 = vector.extract_strided_slice %213 {offsets = [0, 0, 8], sizes = [2, 8, 8], strides = [1, 1, 1]} : vector<2x8x32xf32> to vector<2x8x8xf32>
    %243 = vector.extract_strided_slice %215 {offsets = [0, 0, 8], sizes = [2, 8, 8], strides = [1, 1, 1]} : vector<2x8x32xf32> to vector<2x8x8xf32>
    "tpu.trace_start"() <{level = 10 : i32, message = "bqd,bkd->bqk"}> : () -> ()
    %cst_100 = arith.constant dense<0.000000e+00> : vector<2x8x8xf32>
    %244 = tpu.matmul %241, %242, %cst_100 {dimension_numbers = #tpu.dot_dimension_numbers<[2], [2], [1], [1], [0, 0, 0, 1, 1, 1], [0], [0]>} : vector<2x8x8xf32>, vector<2x8x8xf32>, vector<2x8x8xf32> -> vector<2x8x8xf32>
    "tpu.trace_stop"() : () -> ()
    %cst_101 = arith.constant 0.353553385 : f32
    %245 = vector.broadcast %cst_101 : f32 to vector<2x8x8xf32>
    %246 = arith.mulf %244, %245 : vector<2x8x8xf32>
    %247 = arith.addf %246, %4 : vector<2x8x8xf32>
    %cst_102 = arith.constant dense<0xFF800000> : vector<2x8xf32>
    %248 = vector.multi_reduction <maximumf>, %247, %cst_102 [2] : vector<2x8x8xf32> to vector<2x8xf32>
    %249 = vector.shape_cast %248 : vector<2x8xf32> to vector<2x8x1xf32>
    %250 = vector.broadcast %249 : vector<2x8x1xf32> to vector<2x8x8xf32>
    %251 = arith.subf %247, %250 : vector<2x8x8xf32>
    %252 = math.exp %251 : vector<2x8x8xf32>
    %cst_103 = arith.constant dense<0.000000e+00> : vector<2x8xf32>
    %253 = vector.multi_reduction <add>, %252, %cst_103 [2] : vector<2x8x8xf32> to vector<2x8xf32>
    %254 = vector.shape_cast %253 : vector<2x8xf32> to vector<2x8x1xf32>
    %255 = tpu.reciprocal %254 {approx = true} : vector<2x8x1xf32> -> vector<2x8x1xf32>
    %256 = vector.broadcast %255 : vector<2x8x1xf32> to vector<2x8x8xf32>
    %257 = arith.mulf %252, %256 : vector<2x8x8xf32>
    "tpu.trace_start"() <{level = 10 : i32, message = "bqk,bkd->bqd"}> : () -> ()
    %cst_104 = arith.constant dense<0.000000e+00> : vector<2x8x8xf32>
    %258 = tpu.matmul %257, %243, %cst_104 {dimension_numbers = #tpu.dot_dimension_numbers<[2], [1], [1], [2], [0, 0, 0, 1, 1, 2], [0], [0]>} : vector<2x8x8xf32>, vector<2x8x8xf32>, vector<2x8x8xf32> -> vector<2x8x8xf32>
    "tpu.trace_stop"() : () -> ()
    %259 = vector.shape_cast %258 : vector<2x8x8xf32> to vector<16x8xf32>
    %c1_105 = arith.constant 1 : index
    %c0_106 = arith.constant 0 : index
    %c0_107 = arith.constant 0 : index
    %260 = vector.load %arg5[%c1_105, %c0_106, %c0_107] : memref<2x32x32xf32, #tpu.memory_space<vmem>>, vector<1x32x32xf32>
    %261 = vector.shape_cast %260 : vector<1x32x32xf32> to vector<32x32xf32>
    %262 = vector.extract_strided_slice %261 {offsets = [8, 0], sizes = [8, 32], strides = [1, 1]} : vector<32x32xf32> to vector<8x32xf32>
    %263 = arith.truncf %259 : vector<16x8xf32> to vector<16x8xbf16>
    %264 = arith.truncf %262 : vector<8x32xf32> to vector<8x32xbf16>
    %cst_108 = arith.constant dense<0.000000e+00> : vector<16x32xf32>
    %265 = tpu.matmul %263, %264, %cst_108 {dimension_numbers = #tpu.dot_dimension_numbers<[1], [0], [0], [1], [0, 0, 1, 1], [], []>} : vector<16x8xbf16>, vector<8x32xbf16>, vector<16x32xf32> -> vector<16x32xf32>
    %266 = arith.addf %240, %265 : vector<16x32xf32>
    %267 = vector.extract_strided_slice %211 {offsets = [0, 0, 16], sizes = [2, 8, 8], strides = [1, 1, 1]} : vector<2x8x32xf32> to vector<2x8x8xf32>
    %268 = vector.extract_strided_slice %213 {offsets = [0, 0, 16], sizes = [2, 8, 8], strides = [1, 1, 1]} : vector<2x8x32xf32> to vector<2x8x8xf32>
    %269 = vector.extract_strided_slice %215 {offsets = [0, 0, 16], sizes = [2, 8, 8], strides = [1, 1, 1]} : vector<2x8x32xf32> to vector<2x8x8xf32>
    "tpu.trace_start"() <{level = 10 : i32, message = "bqd,bkd->bqk"}> : () -> ()
    %cst_109 = arith.constant dense<0.000000e+00> : vector<2x8x8xf32>
    %270 = tpu.matmul %267, %268, %cst_109 {dimension_numbers = #tpu.dot_dimension_numbers<[2], [2], [1], [1], [0, 0, 0, 1, 1, 1], [0], [0]>} : vector<2x8x8xf32>, vector<2x8x8xf32>, vector<2x8x8xf32> -> vector<2x8x8xf32>
    "tpu.trace_stop"() : () -> ()
    %cst_110 = arith.constant 0.353553385 : f32
    %271 = vector.broadcast %cst_110 : f32 to vector<2x8x8xf32>
    %272 = arith.mulf %270, %271 : vector<2x8x8xf32>
    %273 = arith.addf %272, %4 : vector<2x8x8xf32>
    %cst_111 = arith.constant dense<0xFF800000> : vector<2x8xf32>
    %274 = vector.multi_reduction <maximumf>, %273, %cst_111 [2] : vector<2x8x8xf32> to vector<2x8xf32>
    %275 = vector.shape_cast %274 : vector<2x8xf32> to vector<2x8x1xf32>
    %276 = vector.broadcast %275 : vector<2x8x1xf32> to vector<2x8x8xf32>
    %277 = arith.subf %273, %276 : vector<2x8x8xf32>
    %278 = math.exp %277 : vector<2x8x8xf32>
    %cst_112 = arith.constant dense<0.000000e+00> : vector<2x8xf32>
    %279 = vector.multi_reduction <add>, %278, %cst_112 [2] : vector<2x8x8xf32> to vector<2x8xf32>
    %280 = vector.shape_cast %279 : vector<2x8xf32> to vector<2x8x1xf32>
    %281 = tpu.reciprocal %280 {approx = true} : vector<2x8x1xf32> -> vector<2x8x1xf32>
    %282 = vector.broadcast %281 : vector<2x8x1xf32> to vector<2x8x8xf32>
    %283 = arith.mulf %278, %282 : vector<2x8x8xf32>
    "tpu.trace_start"() <{level = 10 : i32, message = "bqk,bkd->bqd"}> : () -> ()
    %cst_113 = arith.constant dense<0.000000e+00> : vector<2x8x8xf32>
    %284 = tpu.matmul %283, %269, %cst_113 {dimension_numbers = #tpu.dot_dimension_numbers<[2], [1], [1], [2], [0, 0, 0, 1, 1, 2], [0], [0]>} : vector<2x8x8xf32>, vector<2x8x8xf32>, vector<2x8x8xf32> -> vector<2x8x8xf32>
    "tpu.trace_stop"() : () -> ()
    %285 = vector.shape_cast %284 : vector<2x8x8xf32> to vector<16x8xf32>
    %c1_114 = arith.constant 1 : index
    %c0_115 = arith.constant 0 : index
    %c0_116 = arith.constant 0 : index
    %286 = vector.load %arg5[%c1_114, %c0_115, %c0_116] : memref<2x32x32xf32, #tpu.memory_space<vmem>>, vector<1x32x32xf32>
    %287 = vector.shape_cast %286 : vector<1x32x32xf32> to vector<32x32xf32>
    %288 = vector.extract_strided_slice %287 {offsets = [16, 0], sizes = [8, 32], strides = [1, 1]} : vector<32x32xf32> to vector<8x32xf32>
    %289 = arith.truncf %285 : vector<16x8xf32> to vector<16x8xbf16>
    %290 = arith.truncf %288 : vector<8x32xf32> to vector<8x32xbf16>
    %cst_117 = arith.constant dense<0.000000e+00> : vector<16x32xf32>
    %291 = tpu.matmul %289, %290, %cst_117 {dimension_numbers = #tpu.dot_dimension_numbers<[1], [0], [0], [1], [0, 0, 1, 1], [], []>} : vector<16x8xbf16>, vector<8x32xbf16>, vector<16x32xf32> -> vector<16x32xf32>
    %292 = arith.addf %266, %291 : vector<16x32xf32>
    %293 = vector.extract_strided_slice %211 {offsets = [0, 0, 24], sizes = [2, 8, 8], strides = [1, 1, 1]} : vector<2x8x32xf32> to vector<2x8x8xf32>
    %294 = vector.extract_strided_slice %213 {offsets = [0, 0, 24], sizes = [2, 8, 8], strides = [1, 1, 1]} : vector<2x8x32xf32> to vector<2x8x8xf32>
    %295 = vector.extract_strided_slice %215 {offsets = [0, 0, 24], sizes = [2, 8, 8], strides = [1, 1, 1]} : vector<2x8x32xf32> to vector<2x8x8xf32>
    "tpu.trace_start"() <{level = 10 : i32, message = "bqd,bkd->bqk"}> : () -> ()
    %cst_118 = arith.constant dense<0.000000e+00> : vector<2x8x8xf32>
    %296 = tpu.matmul %293, %294, %cst_118 {dimension_numbers = #tpu.dot_dimension_numbers<[2], [2], [1], [1], [0, 0, 0, 1, 1, 1], [0], [0]>} : vector<2x8x8xf32>, vector<2x8x8xf32>, vector<2x8x8xf32> -> vector<2x8x8xf32>
    "tpu.trace_stop"() : () -> ()
    %cst_119 = arith.constant 0.353553385 : f32
    %297 = vector.broadcast %cst_119 : f32 to vector<2x8x8xf32>
    %298 = arith.mulf %296, %297 : vector<2x8x8xf32>
    %299 = arith.addf %298, %4 : vector<2x8x8xf32>
    %cst_120 = arith.constant dense<0xFF800000> : vector<2x8xf32>
    %300 = vector.multi_reduction <maximumf>, %299, %cst_120 [2] : vector<2x8x8xf32> to vector<2x8xf32>
    %301 = vector.shape_cast %300 : vector<2x8xf32> to vector<2x8x1xf32>
    %302 = vector.broadcast %301 : vector<2x8x1xf32> to vector<2x8x8xf32>
    %303 = arith.subf %299, %302 : vector<2x8x8xf32>
    %304 = math.exp %303 : vector<2x8x8xf32>
    %cst_121 = arith.constant dense<0.000000e+00> : vector<2x8xf32>
    %305 = vector.multi_reduction <add>, %304, %cst_121 [2] : vector<2x8x8xf32> to vector<2x8xf32>
    %306 = vector.shape_cast %305 : vector<2x8xf32> to vector<2x8x1xf32>
    %307 = tpu.reciprocal %306 {approx = true} : vector<2x8x1xf32> -> vector<2x8x1xf32>
    %308 = vector.broadcast %307 : vector<2x8x1xf32> to vector<2x8x8xf32>
    %309 = arith.mulf %304, %308 : vector<2x8x8xf32>
    "tpu.trace_start"() <{level = 10 : i32, message = "bqk,bkd->bqd"}> : () -> ()
    %cst_122 = arith.constant dense<0.000000e+00> : vector<2x8x8xf32>
    %310 = tpu.matmul %309, %295, %cst_122 {dimension_numbers = #tpu.dot_dimension_numbers<[2], [1], [1], [2], [0, 0, 0, 1, 1, 2], [0], [0]>} : vector<2x8x8xf32>, vector<2x8x8xf32>, vector<2x8x8xf32> -> vector<2x8x8xf32>
    "tpu.trace_stop"() : () -> ()
    %311 = vector.shape_cast %310 : vector<2x8x8xf32> to vector<16x8xf32>
    %c1_123 = arith.constant 1 : index
    %c0_124 = arith.constant 0 : index
    %c0_125 = arith.constant 0 : index
    %312 = vector.load %arg5[%c1_123, %c0_124, %c0_125] : memref<2x32x32xf32, #tpu.memory_space<vmem>>, vector<1x32x32xf32>
    %313 = vector.shape_cast %312 : vector<1x32x32xf32> to vector<32x32xf32>
    %314 = vector.extract_strided_slice %313 {offsets = [24, 0], sizes = [8, 32], strides = [1, 1]} : vector<32x32xf32> to vector<8x32xf32>
    %315 = arith.truncf %311 : vector<16x8xf32> to vector<16x8xbf16>
    %316 = arith.truncf %314 : vector<8x32xf32> to vector<8x32xbf16>
    %cst_126 = arith.constant dense<0.000000e+00> : vector<16x32xf32>
    %317 = tpu.matmul %315, %316, %cst_126 {dimension_numbers = #tpu.dot_dimension_numbers<[1], [0], [0], [1], [0, 0, 1, 1], [], []>} : vector<16x8xbf16>, vector<8x32xbf16>, vector<16x32xf32> -> vector<16x32xf32>
    %318 = arith.addf %292, %317 : vector<16x32xf32>
    %c1_127 = arith.constant 1 : index
    %c0_128 = arith.constant 0 : index
    %c0_129 = arith.constant 0 : index
    %319 = vector.load %arg6[%c1_127, %c0_128, %c0_129] : memref<2x1x32xf32, #tpu.memory_space<vmem>>, vector<1x1x32xf32>
    %320 = vector.shape_cast %319 : vector<1x1x32xf32> to vector<1x32xf32>
    %321 = vector.broadcast %320 : vector<1x32xf32> to vector<16x32xf32>
    %322 = arith.addf %318, %321 : vector<16x32xf32>
    %323 = arith.addf %200, %322 : vector<16x32xf32>
    %c1_130 = arith.constant 1 : index
    %c0_131 = arith.constant 0 : index
    %c0_132 = arith.constant 0 : index
    %324 = vector.load %arg7[%c1_130, %c0_131, %c0_132] : memref<2x1x32xf32, #tpu.memory_space<vmem>>, vector<1x1x32xf32>
    %325 = vector.shape_cast %324 : vector<1x1x32xf32> to vector<1x32xf32>
    %c1_133 = arith.constant 1 : index
    %c0_134 = arith.constant 0 : index
    %c0_135 = arith.constant 0 : index
    %326 = vector.load %arg8[%c1_133, %c0_134, %c0_135] : memref<2x1x32xf32, #tpu.memory_space<vmem>>, vector<1x1x32xf32>
    %327 = vector.shape_cast %326 : vector<1x1x32xf32> to vector<1x32xf32>
    %cst_136 = arith.constant dense<0.000000e+00> : vector<16xf32>
    %328 = vector.multi_reduction <add>, %323, %cst_136 [1] : vector<16x32xf32> to vector<16xf32>
    %329 = vector.shape_cast %328 : vector<16xf32> to vector<16x1xf32>
    %cst_137 = arith.constant 3.200000e+01 : f32
    %330 = vector.broadcast %cst_137 : f32 to vector<16x1xf32>
    %331 = arith.divf %329, %330 : vector<16x1xf32>
    %332 = vector.broadcast %331 : vector<16x1xf32> to vector<16x32xf32>
    %333 = arith.subf %323, %332 : vector<16x32xf32>
    %334 = arith.mulf %333, %333 : vector<16x32xf32>
    %cst_138 = arith.constant dense<0.000000e+00> : vector<16xf32>
    %335 = vector.multi_reduction <add>, %334, %cst_138 [1] : vector<16x32xf32> to vector<16xf32>
    %336 = vector.shape_cast %335 : vector<16xf32> to vector<16x1xf32>
    %cst_139 = arith.constant 3.200000e+01 : f32
    %337 = vector.broadcast %cst_139 : f32 to vector<16x1xf32>
    %338 = arith.divf %336, %337 : vector<16x1xf32>
    %339 = vector.broadcast %331 : vector<16x1xf32> to vector<16x32xf32>
    %340 = arith.subf %323, %339 : vector<16x32xf32>
    %cst_140 = arith.constant 9.99999974E-6 : f32
    %341 = vector.broadcast %cst_140 : f32 to vector<16x1xf32>
    %342 = arith.addf %338, %341 : vector<16x1xf32>
    %343 = math.rsqrt %342 : vector<16x1xf32>
    %344 = vector.broadcast %343 : vector<16x1xf32> to vector<16x32xf32>
    %345 = arith.mulf %340, %344 : vector<16x32xf32>
    %346 = vector.broadcast %325 : vector<1x32xf32> to vector<16x32xf32>
    %347 = arith.mulf %345, %346 : vector<16x32xf32>
    %348 = vector.broadcast %327 : vector<1x32xf32> to vector<16x32xf32>
    %349 = arith.addf %347, %348 : vector<16x32xf32>
    %c1_141 = arith.constant 1 : index
    %c0_142 = arith.constant 0 : index
    %c0_143 = arith.constant 0 : index
    %350 = vector.load %arg9[%c1_141, %c0_142, %c0_143] : memref<2x32x64xf32, #tpu.memory_space<vmem>>, vector<1x32x64xf32>
    %351 = vector.shape_cast %350 : vector<1x32x64xf32> to vector<32x64xf32>
    %352 = arith.truncf %349 : vector<16x32xf32> to vector<16x32xbf16>
    %353 = arith.truncf %351 : vector<32x64xf32> to vector<32x64xbf16>
    %cst_144 = arith.constant dense<0.000000e+00> : vector<16x64xf32>
    %354 = tpu.matmul %352, %353, %cst_144 {dimension_numbers = #tpu.dot_dimension_numbers<[1], [0], [0], [1], [0, 0, 1, 1], [], []>} : vector<16x32xbf16>, vector<32x64xbf16>, vector<16x64xf32> -> vector<16x64xf32>
    %c1_145 = arith.constant 1 : index
    %c0_146 = arith.constant 0 : index
    %c0_147 = arith.constant 0 : index
    %355 = vector.load %arg10[%c1_145, %c0_146, %c0_147] : memref<2x1x64xf32, #tpu.memory_space<vmem>>, vector<1x1x64xf32>
    %356 = vector.shape_cast %355 : vector<1x1x64xf32> to vector<1x64xf32>
    %357 = vector.broadcast %356 : vector<1x64xf32> to vector<16x64xf32>
    %358 = arith.addf %354, %357 : vector<16x64xf32>
    %cst_148 = arith.constant 0.000000e+00 : f32
    %359 = vector.broadcast %cst_148 : f32 to vector<16x64xf32>
    %360 = arith.maximumf %358, %359 : vector<16x64xf32>
    %c1_149 = arith.constant 1 : index
    %c0_150 = arith.constant 0 : index
    %c0_151 = arith.constant 0 : index
    %361 = vector.load %arg11[%c1_149, %c0_150, %c0_151] : memref<2x64x32xf32, #tpu.memory_space<vmem>>, vector<1x64x32xf32>
    %362 = vector.shape_cast %361 : vector<1x64x32xf32> to vector<64x32xf32>
    %363 = arith.truncf %360 : vector<16x64xf32> to vector<16x64xbf16>
    %364 = arith.truncf %362 : vector<64x32xf32> to vector<64x32xbf16>
    %cst_152 = arith.constant dense<0.000000e+00> : vector<16x32xf32>
    %365 = tpu.matmul %363, %364, %cst_152 {dimension_numbers = #tpu.dot_dimension_numbers<[1], [0], [0], [1], [0, 0, 1, 1], [], []>} : vector<16x64xbf16>, vector<64x32xbf16>, vector<16x32xf32> -> vector<16x32xf32>
    %c1_153 = arith.constant 1 : index
    %c0_154 = arith.constant 0 : index
    %c0_155 = arith.constant 0 : index
    %366 = vector.load %arg12[%c1_153, %c0_154, %c0_155] : memref<2x1x32xf32, #tpu.memory_space<vmem>>, vector<1x1x32xf32>
    %367 = vector.shape_cast %366 : vector<1x1x32xf32> to vector<1x32xf32>
    %368 = vector.broadcast %367 : vector<1x32xf32> to vector<16x32xf32>
    %369 = arith.addf %365, %368 : vector<16x32xf32>
    %370 = arith.addf %349, %369 : vector<16x32xf32>
    %c1_156 = arith.constant 1 : index
    %c0_157 = arith.constant 0 : index
    %c0_158 = arith.constant 0 : index
    %371 = vector.load %arg13[%c1_156, %c0_157, %c0_158] : memref<2x1x32xf32, #tpu.memory_space<vmem>>, vector<1x1x32xf32>
    %372 = vector.shape_cast %371 : vector<1x1x32xf32> to vector<1x32xf32>
    %c1_159 = arith.constant 1 : index
    %c0_160 = arith.constant 0 : index
    %c0_161 = arith.constant 0 : index
    %373 = vector.load %arg14[%c1_159, %c0_160, %c0_161] : memref<2x1x32xf32, #tpu.memory_space<vmem>>, vector<1x1x32xf32>
    %374 = vector.shape_cast %373 : vector<1x1x32xf32> to vector<1x32xf32>
    %cst_162 = arith.constant dense<0.000000e+00> : vector<16xf32>
    %375 = vector.multi_reduction <add>, %370, %cst_162 [1] : vector<16x32xf32> to vector<16xf32>
    %376 = vector.shape_cast %375 : vector<16xf32> to vector<16x1xf32>
    %cst_163 = arith.constant 3.200000e+01 : f32
    %377 = vector.broadcast %cst_163 : f32 to vector<16x1xf32>
    %378 = arith.divf %376, %377 : vector<16x1xf32>
    %379 = vector.broadcast %378 : vector<16x1xf32> to vector<16x32xf32>
    %380 = arith.subf %370, %379 : vector<16x32xf32>
    %381 = arith.mulf %380, %380 : vector<16x32xf32>
    %cst_164 = arith.constant dense<0.000000e+00> : vector<16xf32>
    %382 = vector.multi_reduction <add>, %381, %cst_164 [1] : vector<16x32xf32> to vector<16xf32>
    %383 = vector.shape_cast %382 : vector<16xf32> to vector<16x1xf32>
    %cst_165 = arith.constant 3.200000e+01 : f32
    %384 = vector.broadcast %cst_165 : f32 to vector<16x1xf32>
    %385 = arith.divf %383, %384 : vector<16x1xf32>
    %386 = vector.broadcast %378 : vector<16x1xf32> to vector<16x32xf32>
    %387 = arith.subf %370, %386 : vector<16x32xf32>
    %cst_166 = arith.constant 9.99999974E-6 : f32
    %388 = vector.broadcast %cst_166 : f32 to vector<16x1xf32>
    %389 = arith.addf %385, %388 : vector<16x1xf32>
    %390 = math.rsqrt %389 : vector<16x1xf32>
    %391 = vector.broadcast %390 : vector<16x1xf32> to vector<16x32xf32>
    %392 = arith.mulf %387, %391 : vector<16x32xf32>
    %393 = vector.broadcast %372 : vector<1x32xf32> to vector<16x32xf32>
    %394 = arith.mulf %392, %393 : vector<16x32xf32>
    %395 = vector.broadcast %374 : vector<1x32xf32> to vector<16x32xf32>
    %396 = arith.addf %394, %395 : vector<16x32xf32>
    %397 = vector.shape_cast %396 : vector<16x32xf32> to vector<2x8x32xf32>
    %398 = vector.extract_strided_slice %397 {offsets = [0, 0, 0], sizes = [2, 1, 32], strides = [1, 1, 1]} : vector<2x8x32xf32> to vector<2x1x32xf32>
    %399 = vector.shape_cast %398 : vector<2x1x32xf32> to vector<2x32xf32>
    %c0_167 = arith.constant 0 : index
    %c0_168 = arith.constant 0 : index
    %400 = vector.load %arg15[%c0_167, %c0_168] : memref<32x1xf32, #tpu.memory_space<vmem>>, vector<32x1xf32>
    %cst_169 = arith.constant dense<0.000000e+00> : vector<2x1xf32>
    %401 = tpu.matmul %399, %400, %cst_169 {dimension_numbers = #tpu.dot_dimension_numbers<[1], [0], [0], [1], [0, 0, 1, 1], [], []>} : vector<2x32xf32>, vector<32x1xf32>, vector<2x1xf32> -> vector<2x1xf32>
    %c0_170 = arith.constant 0 : index
    %c0_171 = arith.constant 0 : index
    %402 = vector.load %arg16[%c0_170, %c0_171] : memref<1x1xf32, #tpu.memory_space<vmem>>, vector<1x1xf32>
    %403 = vector.broadcast %402 : vector<1x1xf32> to vector<2x1xf32>
    %404 = arith.addf %401, %403 : vector<2x1xf32>
    %c0_172 = arith.constant 0 : index
    %c0_173 = arith.constant 0 : index
    %405 = vector.load %arg17[%c0_172, %c0_173] : memref<2x1xf32, #tpu.memory_space<vmem>>, vector<2x1xf32>
    tpu.vector_store %arg17[%c0_172, %c0_173], %404 {strides = array<i32>} : memref<2x1xf32, #tpu.memory_space<vmem>>, vector<2x1xf32>,
    return
  }
  func.func @transform_0(%arg0: i32) -> (i32, i32) {
    %c0_i32 = arith.constant 0 : i32
    %c0_i32_0 = arith.constant 0 : i32
    %c0_i32_1 = arith.constant 0 : i32
    return %c0_i32, %c0_i32_0 : i32, i32
  }
  func.func @transform_1(%arg0: i32) -> (i32, i32) {
    %c0_i32 = arith.constant 0 : i32
    %c0_i32_0 = arith.constant 0 : i32
    %c0_i32_1 = arith.constant 0 : i32
    return %c0_i32, %c0_i32_0 : i32, i32
  }
  func.func @transform_2(%arg0: i32) -> (i32, i32, i32) {
    %c0_i32 = arith.constant 0 : i32
    %c0_i32_0 = arith.constant 0 : i32
    %c0_i32_1 = arith.constant 0 : i32
    %c0_i32_2 = arith.constant 0 : i32
    return %c0_i32, %c0_i32_0, %c0_i32_1 : i32, i32, i32
  }
  func.func @transform_3(%arg0: i32) -> (i32, i32, i32) {
    %c0_i32 = arith.constant 0 : i32
    %c0_i32_0 = arith.constant 0 : i32
    %c0_i32_1 = arith.constant 0 : i32
    %c0_i32_2 = arith.constant 0 : i32
    return %c0_i32, %c0_i32_0, %c0_i32_1 : i32, i32, i32
  }
  func.func @transform_4(%arg0: i32) -> (i32, i32, i32) {
    %c0_i32 = arith.constant 0 : i32
    %c0_i32_0 = arith.constant 0 : i32
    %c0_i32_1 = arith.constant 0 : i32
    %c0_i32_2 = arith.constant 0 : i32
    return %c0_i32, %c0_i32_0, %c0_i32_1 : i32, i32, i32
  }
  func.func @transform_5(%arg0: i32) -> (i32, i32, i32) {
    %c0_i32 = arith.constant 0 : i32
    %c0_i32_0 = arith.constant 0 : i32
    %c0_i32_1 = arith.constant 0 : i32
    %c0_i32_2 = arith.constant 0 : i32
    return %c0_i32, %c0_i32_0, %c0_i32_1 : i32, i32, i32
  }
  func.func @transform_6(%arg0: i32) -> (i32, i32, i32) {
    %c0_i32 = arith.constant 0 : i32
    %c0_i32_0 = arith.constant 0 : i32
    %c0_i32_1 = arith.constant 0 : i32
    %c0_i32_2 = arith.constant 0 : i32
    return %c0_i32, %c0_i32_0, %c0_i32_1 : i32, i32, i32
  }
  func.func @transform_7(%arg0: i32) -> (i32, i32, i32) {
    %c0_i32 = arith.constant 0 : i32
    %c0_i32_0 = arith.constant 0 : i32
    %c0_i32_1 = arith.constant 0 : i32
    %c0_i32_2 = arith.constant 0 : i32
    return %c0_i32, %c0_i32_0, %c0_i32_1 : i32, i32, i32
  }
  func.func @transform_8(%arg0: i32) -> (i32, i32, i32) {
    %c0_i32 = arith.constant 0 : i32
    %c0_i32_0 = arith.constant 0 : i32
    %c0_i32_1 = arith.constant 0 : i32
    %c0_i32_2 = arith.constant 0 : i32
    return %c0_i32, %c0_i32_0, %c0_i32_1 : i32, i32, i32
  }
  func.func @transform_9(%arg0: i32) -> (i32, i32, i32) {
    %c0_i32 = arith.constant 0 : i32
    %c0_i32_0 = arith.constant 0 : i32
    %c0_i32_1 = arith.constant 0 : i32
    %c0_i32_2 = arith.constant 0 : i32
    return %c0_i32, %c0_i32_0, %c0_i32_1 : i32, i32, i32
  }
  func.func @transform_10(%arg0: i32) -> (i32, i32, i32) {
    %c0_i32 = arith.constant 0 : i32
    %c0_i32_0 = arith.constant 0 : i32
    %c0_i32_1 = arith.constant 0 : i32
    %c0_i32_2 = arith.constant 0 : i32
    return %c0_i32, %c0_i32_0, %c0_i32_1 : i32, i32, i32
  }
  func.func @transform_11(%arg0: i32) -> (i32, i32, i32) {
    %c0_i32 = arith.constant 0 : i32
    %c0_i32_0 = arith.constant 0 : i32
    %c0_i32_1 = arith.constant 0 : i32
    %c0_i32_2 = arith.constant 0 : i32
    return %c0_i32, %c0_i32_0, %c0_i32_1 : i32, i32, i32
  }
  func.func @transform_12(%arg0: i32) -> (i32, i32, i32) {
    %c0_i32 = arith.constant 0 : i32
    %c0_i32_0 = arith.constant 0 : i32
    %c0_i32_1 = arith.constant 0 : i32
    %c0_i32_2 = arith.constant 0 : i32
    return %c0_i32, %c0_i32_0, %c0_i32_1 : i32, i32, i32
  }
  func.func @transform_13(%arg0: i32) -> (i32, i32, i32) {
    %c0_i32 = arith.constant 0 : i32
    %c0_i32_0 = arith.constant 0 : i32
    %c0_i32_1 = arith.constant 0 : i32
    %c0_i32_2 = arith.constant 0 : i32
    return %c0_i32, %c0_i32_0, %c0_i32_1 : i32, i32, i32
  }
  func.func @transform_14(%arg0: i32) -> (i32, i32) {
    %c0_i32 = arith.constant 0 : i32
    %c0_i32_0 = arith.constant 0 : i32
    %c0_i32_1 = arith.constant 0 : i32
    return %c0_i32, %c0_i32_0 : i32, i32
  }
  func.func @transform_15(%arg0: i32) -> (i32, i32) {
    %c0_i32 = arith.constant 0 : i32
    %c0_i32_0 = arith.constant 0 : i32
    %c0_i32_1 = arith.constant 0 : i32
    return %c0_i32, %c0_i32_0 : i32, i32
  }
  func.func @transform_16(%arg0: i32) -> (i32, i32) {
    %c0_i32 = arith.constant 0 : i32
    %c0_i32_0 = arith.constant 0 : i32
    %c0_i32_1 = arith.constant 0 : i32
    return %c0_i32, %c0_i32_0 : i32, i32
  }
}

</mosaic_0001>

<bundles_post_ra>
// kernel: tpu_custom_call.1
= control target key start
LH: loop header
LB: loop body
LE: loop exit
PB: predicated region body
PF: predicated region fallthrough
CT: control target
= control target key end

     0   :  { %v4430_v0 = vmov 0.0   ;;  %vm4431_vm0 = vmmov 0   ;;  %vm106_vm1 = vcmask 261120   ;;  %vm154_vm2 = vcmask 64512   ;;  %s4435_s24 = smov 88   ;;  %s4436_s25 = smov 120   ;;  %s5160_s2 = inlined_call_operand.vmem [shape: f32[2,32,96], index: 2, kind: input, shape index: {}]   ;;  %s5161_s0 = inlined_call_operand.vmem [shape: f32[16,32], index: 0, kind: input, shape index: {}]   ;;  %s5162_s3 = inlined_call_operand.vmem [shape: f32[2,1,96], index: 3, kind: input, shape index: {}]   ;;  %s5163_s1 = inlined_call_operand.vmem [shape: f32[2,8], index: 1, kind: input, shape index: {}]   ;;  %s5164_s4 = inlined_call_operand.vmem [shape: f32[2,32,32], index: 4, kind: input, shape index: {}]   ;;  %s5165_s5 = inlined_call_operand.vmem [shape: f32[2,1,32], index: 5, kind: input, shape index: {}]   ;;  %s5166_s8 = inlined_call_operand.vmem [shape: f32[2,32,64], index: 8, kind: input, shape index: {}]   ;;  %s5167_s10 = inlined_call_operand.vmem [shape: f32[2,64,32], index: 10, kind: input, shape index: {}]   ;;  %s5168_s6 = inlined_call_operand.vmem [shape: f32[2,1,32], index: 6, kind: input, shape index: {}]   ;;  %s5169_s7 = inlined_call_operand.vmem [shape: f32[2,1,32], index: 7, kind: input, shape index: {}]   ;;  %s5170_s9 = inlined_call_operand.vmem [shape: f32[2,1,64], index: 9, kind: input, shape index: {}]   ;;  %s5171_s11 = inlined_call_operand.vmem [shape: f32[2,1,32], index: 11, kind: input, shape index: {}]   ;;  %s5172_s12 = inlined_call_operand.vmem [shape: f32[2,1,32], index: 12, kind: input, shape index: {}]   ;;  %s5173_s13 = inlined_call_operand.vmem [shape: f32[2,1,32], index: 13, kind: input, shape index: {}]   ;;  %s5174_s14 = inlined_call_operand.vmem [shape: f32[32,1], index: 14, kind: input, shape index: {}]   ;;  %s5175_s15 = inlined_call_operand.<no memory space> [shape: f32[1,1], index: 15, kind: input, shape index: {}]   ;;  %s5176_s16 = inlined_call_operand.vmem [shape: f32[2,1], index: 16, kind: output, shape index: {}]  }
   0x1   :  { %5184 = sst [smem:[#allocation3_spill]] %s5160_s2  ;;  %4061 = vmatprep.subr.bf16.mxu0 %v4430_v0  ;;  %4065 = vmatprep.mubr.msk.bf16.mxu0 %vm4431_vm0, %v4430_v0  ;;  %v4550_v7 = vld [vmem:[%s5161_s0] sm:$0xff]  ;;  %v4555_v8 = vld [vmem:[%s5161_s0 + $0x8] sm:$0xff]  ;;  %s4432_s0 = smov 96   ;;  %v4433_v19 = vmov 1966171168   ;;  %v71_v21 = vlaneseq }
   0x2   :  { %s5185_s23 = sld [smem:[#allocation3_spill]]  ;;  %4069 = vmatprep.subr.mxu1 %v4430_v0  ;;  %4071 = vmatprep.mubr.msk.f32.mxu1 %vm4431_vm0, %v4430_v0  ;;  %v96_v9 = vpack.c.bf16 %v4555_v8, %v4550_v7  ;;  %v3846_v10 = vld [vmem:[%s5162_s3] ss:$0 sm:$0xff]  ;;  %v69_v20 = vunpack.c.l.s4 %v4433_v19  ;;  %s4437_s26 = smov 56   ;;  %vm827_vm3 = vcmask 1043456   ;;  %vm1827_vm4 = vcmask 523264  }
   0x3   :  { %v72_v23 = vshrl.u32 %v71_v21, 7  ;;  %v3845_v25 = vld.sshfl [vmem:[%s5163_s1] sm:$0x11 pattern:$0x75316420]  ;;  %s4434_s1 = smov 64  }
   0x4   :  { %v70_v22 = vunpack.c.0.s8 %v69_v20  ;;  %v67_v26 = vcombine.high %v3845_v25, %v3845_v25  ;;  %s4438_s27 = smov 80   ;;  %s4439_s28 = smov 112   ;;  %vm3765_vm5 = vcmask 1041409   ;;  %vm3839_vm6 = vcmask 1024  }
   0x5   :  { %v84_v28 = vsub.s32 0, %v72_v23  ;;  %s4440_s29 = smov 72   ;;  %s5182_s19 = smov 48  }
   0x6   :  { %v73_v24 = vsub.s32 %v70_v22, %v72_v23  ;;  %s5180_s20 = smov 104   ;;  %s5178_s21 = smov 40  }
   0x8   :  { %v94_v1 = vld [vmem:[%s5185_s23 + $0x10] sm:$0xff]  ;;  %v95_v2 = vld [vmem:[%s5185_s23 + $0x18] sm:$0xff]  ;;  %v92_v3 = vld [vmem:[%s5185_s23] sm:$0xff]  ;;  %v74_v27 = vrot.slane %v3845_v25, %v73_v24  ;;  %v81_v30 = vrot.slane %v67_v26, %v73_v24 }
   0x9   :  { %v98_v4 = vpack.c.bf16 %v95_v2, %v94_v1  ;;  %v93_v5 = vld [vmem:[%s5185_s23 + $0x8] sm:$0xff] }
   0xa   :  { %v97_v6 = vpack.c.bf16 %v93_v5, %v92_v3  ;;  %v4590_v29 = vrot.slane %v74_v27, %v84_v28  ;;  %v4593_v35 = vrot.slane %v81_v30, %v84_v28 }
   0xb   :  { %4062 = vmatpush3.bf16.msra.mxu0 %v98_v4 }
   0xc   :  { %4063 = vmatprep.subr.bf16.mxu0 %v4430_v0 }
   0xf   :  { %4064 = vmatpush3.bf16.msra.mxu0 %v97_v6 }
  0x10   :  { %4094 = vmatprep.subr.mxu0 %v4430_v0 }
  0x12   :  { %4066 = vmatmul.mubr.msk.bf16.vlgmr.msra.gmra.mxu0 %vm106_vm1, %v96_v9 }
  0x13   :  { %4096 = vmatprep.mubr.msk.f32.mxu0 %vm4431_vm0, %v4430_v0 }
  0xd2   :  { %v144_v11 = vpop.f32.mrf.mxu0 }
  0xd3   :  { %v4567_v12 = vadd.f32 %v3846_v10, %v144_v11 }
  0xd4   :  { %v4067_v13 = vpop.f32.mrf.mxu0 }
  0xd5   :  { %152 = vrot.lane.b32.xlu0 %v4567_v12, %s4432_s0 }
  0xd6   :  { %v147_v14 = vpop.f32.mrf.mxu0 }
  0xd7   :  { %v4571_v15 = vadd.f32 %v3846_v10, %v147_v14 }
  0xd8   :  { %v4068_v16 = vpop.f32.mrf.mxu0 }
  0xd9   :  { %230 = vrot.lane.b32.xlu0 %v4571_v15, %s4432_s0 }
 0x147   :  { %v153_v17 = vpop.permute.xlu0 %152 }
 0x148   :  { %4070 = vmatpush3.xpose.msk.msra.mxu1 %vm154_vm2, %v153_v17 }
 0x149   :  { %4074 = vmatprep.subr.mxu1 %v4430_v0 }
 0x14b   :  { %4072 = vmatmul.mubr.msk.f32.vlgmr.msra.gmra.mxu1 %vm154_vm2, %v4567_v12  ;;  %v231_v18 = vpop.permute.xlu0 %230 }
 0x14c   :  { %4075 = vmatpush3.xpose.msk.msra.mxu1 %vm154_vm2, %v231_v18  ;;  %4076 = vmatprep.mubr.msk.f32.mxu1 %vm4431_vm0, %v4430_v0 }
 0x14d   :  { %4079 = vmatprep.subr.mxu1 %v4430_v0 }
 0x14f   :  { %4077 = vmatmul.mubr.msk.f32.vlgmr.msra.gmra.mxu1 %vm154_vm2, %v4571_v15 }
 0x150   :  { %4081 = vmatprep.mubr.msk.f32.mxu1 %vm4431_vm0, %v4430_v0 }
 0x20b   :  { %v225_v31 = vpop.f32.mrf.mxu1 }
 0x20c   :  { %v306_v32 = vmul.f32 0.35355338, %v225_v31 }
 0x20d   :  { %v4073_v33 = vpop.f32.mrf.mxu1 }
 0x20e   :  { %v308_v34 = vadd.f32 %v306_v32, %v4590_v29  ;;  %v484_v33 = vld [vmem:[%s5164_s4] sm:$0xff] }
 0x20f   :  { %v302_v36 = vpop.f32.mrf.mxu1 }
 0x210   :  { %v307_v37 = vmul.f32 0.35355338, %v302_v36  ;;  %v310_v38 = vsel %vm154_vm2, %v308_v34, -inf }
 0x211   :  { %311 = vmax.xlane.f32.xlu1 %v310_v38  ;;  %v4078_v39 = vpop.f32.mrf.mxu1 }
 0x212   :  { %v309_v40 = vadd.f32 %v307_v37, %v4593_v35 }
 0x214   :  { %v313_v41 = vsel %vm154_vm2, %v309_v40, -inf }
 0x215   :  { %314 = vmax.xlane.f32.xlu1 %v313_v41 }
 0x226   :  { %332 = vrot.lane.b32.xlu1 %v4567_v12, %s4434_s1 }
 0x22a   :  { %408 = vrot.lane.b32.xlu1 %v4571_v15, %s4434_s1 }
 0x22e   :  { %489 = vrot.lane.b32.xlu1 %v4567_v12, %s4435_s24 }
 0x232   :  { %567 = vrot.lane.b32.xlu1 %v4571_v15, %s4435_s24 }
 0x29a   :  { %v312_v42 = vpop.xlane.xlu1 %311 }
 0x29b   :  { %v316_v43 = vsub.f32 %v308_v34, %v312_v42  ;;  %v486_v34 = vpack.c.bf16 %v484_v33, %v484_v33 }
 0x29d   :  { %v318_v44 = vmul.f32 1.442695, %v316_v43  ;;  %v876_v38 = vsel %vm827_vm3, %v486_v34, 0 }
 0x29e   :  { %v315_v45 = vpop.xlane.xlu1 %314 }
 0x29f   :  { %4350 = vpow2.f32 %v318_v44  ;;  %v317_v46 = vsub.f32 %v309_v40, %v315_v45  ;;  %v821_v45 = vld [vmem:[%s5164_s4 + $0x8] sm:$0xff] }
 0x2a1   :  { %v320_v47 = vmul.f32 1.442695, %v317_v46  ;;  %v823_v46 = vpack.c.bf16 %v821_v45, %v821_v45 }
 0x2a2   :  { %v333_v48 = vpop.permute.xlu1 %332 }
 0x2a3   :  { %4352 = vpow2.f32 %v320_v47  ;;  %4080 = vmatpush3.msra.mxu1 %v333_v48  ;;  %v829_v47 = vsel %vm827_vm3, %v823_v46, 0 }
 0x2a4   :  { %4084 = vmatprep.subr.mxu1 %v4430_v0 }
 0x2a6   :  { %v409_v49 = vpop.permute.xlu1 %408 }
 0x2aa   :  { %v490_v50 = vpop.permute.xlu1 %489 }
 0x2ac   :  { %v4351_v51 = vpop.eup %4350 }
 0x2ad   :  { %v322_v52 = vsel %vm154_vm2, %v4351_v51, 0.0 }
 0x2ae   :  { %323 = vadd.xlane.f32.xlu0 %v322_v52  ;;  %v568_v53 = vpop.permute.xlu1 %567 }
 0x2af   :  { %4095 = vmatpush3.xpose.msk.msra.mxu0 %vm154_vm2, %v568_v53 }
 0x2b0   :  { %v4353_v54 = vpop.eup %4352  ;;  %4104 = vmatprep.subr.mxu0 %v4430_v0 }
 0x2b1   :  { %v325_v55 = vsel %vm154_vm2, %v4353_v54, 0.0 }
 0x2b2   :  { %326 = vadd.xlane.f32.xlu1 %v325_v55 }
 0x2c3   :  { %565 = vrot.lane.b32.xlu1 %v4571_v15, %s4436_s25 }
 0x2c4   :  { %487 = vrot.lane.b32.xlu0 %v4567_v12, %s4436_s25 }
 0x337   :  { %v324_v56 = vpop.xlane.xlu0 %323 }
 0x338   :  { %4354 = vrcp.f32 %v324_v56 }
 0x33b   :  { %v327_v57 = vpop.xlane.xlu1 %326  ;;  %v488_v63 = vpop.permute.xlu0 %487 }
 0x33c   :  { %4356 = vrcp.f32 %v327_v57 }
 0x33f   :  { %v566_v58 = vpop.permute.xlu1 %565 }
 0x340   :  { %4097 = vmatmul.mubr.msk.f32.vlgmr.msra.gmra.mxu0 %vm154_vm2, %v566_v58 }
 0x341   :  { %4106 = vmatprep.mubr.msk.f32.mxu0 %vm4431_vm0, %v4430_v0 }
 0x345   :  { %v4355_v59 = vpop.eup %4354 }
 0x346   :  { %v330_v60 = vmul.f32 %v4355_v59, %v4351_v51 }
 0x348   :  { %4082 = vmatmul.mubr.msk.f32.vlgmr.msra.gmra.mxu1 %vm154_vm2, %v330_v60 }
 0x349   :  { %v4357_v61 = vpop.eup %4356  ;;  %4085 = vmatpush3.msra.mxu1 %v409_v49  ;;  %4086 = vmatprep.mubr.msk.f32.mxu1 %vm4431_vm0, %v4430_v0 }
 0x34a   :  { %4089 = vmatprep.subr.mxu1 %v4430_v0  ;;  %v331_v62 = vmul.f32 %v4357_v61, %v4353_v54 }
 0x34c   :  { %4087 = vmatmul.mubr.msk.f32.vlgmr.msra.gmra.mxu1 %vm154_vm2, %v331_v62 }
 0x34d   :  { %4090 = vmatpush3.xpose.msk.msra.mxu1 %vm154_vm2, %v490_v50  ;;  %4091 = vmatprep.mubr.msk.f32.mxu1 %vm4431_vm0, %v4430_v0 }
 0x34e   :  { %4099 = vmatprep.subr.mxu1 %v4430_v0 }
 0x350   :  { %4092 = vmatmul.mubr.msk.f32.vlgmr.msra.gmra.mxu1 %vm154_vm2, %v488_v63 }
 0x351   :  { %4101 = vmatprep.mubr.msk.f32.mxu1 %vm4431_vm0, %v4430_v0 }
 0x400   :  { %v639_v1 = vpop.f32.mrf.mxu0 }
 0x401   :  { %v644_v2 = vmul.f32 0.35355338, %v639_v1 }
 0x402   :  { %v4098_v3 = vpop.f32.mrf.mxu0 }
 0x403   :  { %v646_v4 = vadd.f32 %v644_v2, %v4593_v35 }
 0x405   :  { %v650_v5 = vsel %vm154_vm2, %v646_v4, -inf }
 0x406   :  { %651 = vmax.xlane.f32.xlu0 %v650_v5 }
 0x408   :  { %v404_v6 = vpop.f32.mrf.mxu1 }
 0x40a   :  { %v4083_v9 = vpop.f32.mrf.mxu1 }
 0x40c   :  { %v480_v10 = vpop.f32.mrf.mxu1 }
 0x40d   :  { %v485_v11 = vpack.c.bf16 %v480_v10, %v404_v6 }
 0x40e   :  { %v4088_v13 = vpop.f32.mrf.mxu1 }
 0x410   :  { %v561_v14 = vpop.f32.mrf.mxu1 }
 0x411   :  { %v643_v16 = vmul.f32 0.35355338, %v561_v14 }
 0x412   :  { %v4093_v17 = vpop.f32.mrf.mxu1 }
 0x413   :  { %v645_v18 = vadd.f32 %v643_v16, %v4590_v29 }
 0x415   :  { %v647_v19 = vsel %vm154_vm2, %v645_v18, -inf }
 0x416   :  { %648 = vmax.xlane.f32.xlu1 %v647_v19 }
 0x41c   :  { %745 = vrot.lane.b32.xlu0 %v4571_v15, %s4437_s26 }
 0x420   :  { %921 = vrot.lane.b32.xlu0 %v4567_v12, %s4438_s27 }
 0x48f   :  { %v652_v20 = vpop.xlane.xlu0 %651 }
 0x490   :  { %v654_v21 = vsub.f32 %v646_v4, %v652_v20 }
 0x492   :  { %v657_v22 = vmul.f32 1.442695, %v654_v21 }
 0x493   :  { %v746_v23 = vpop.permute.xlu0 %745 }
 0x494   :  { %4358 = vpow2.f32 %v657_v22  ;;  %4105 = vmatpush3.msra.mxu0 %v746_v23 }
 0x495   :  { %4115 = vmatprep.subr.bf16.mxu0 %v4430_v0 }
 0x497   :  { %v922_v62 = vpop.permute.xlu0 %921 }
 0x49f   :  { %v649_v24 = vpop.xlane.xlu1 %648 }
 0x4a0   :  { %v653_v25 = vsub.f32 %v645_v18, %v649_v24 }
 0x4a1   :  { %v4359_v26 = vpop.eup %4358 }
 0x4a2   :  { %v655_v27 = vmul.f32 1.442695, %v653_v25  ;;  %v662_v28 = vsel %vm154_vm2, %v4359_v26, 0.0 }
 0x4a3   :  { %663 = vadd.xlane.f32.xlu1 %v662_v28 }
 0x4a4   :  { %4360 = vpow2.f32 %v655_v27 }
 0x4b1   :  { %v4361_v30 = vpop.eup %4360 }
 0x4b2   :  { %v659_v31 = vsel %vm154_vm2, %v4361_v30, 0.0 }
 0x4b3   :  { %660 = vadd.xlane.f32.xlu1 %v659_v31 }
 0x4c4   :  { %669 = vrot.lane.b32.xlu1 %v4567_v12, %s4437_s26 }
 0x4c8   :  { %999 = vrot.lane.b32.xlu1 %v4571_v15, %s4438_s27 }
 0x4cc   :  { %997 = vrot.lane.b32.xlu1 %v4571_v15, %s4439_s28 }
 0x4d0   :  { %919 = vrot.lane.b32.xlu1 %v4567_v12, %s4439_s28 }
 0x4d4   :  { %1307 = vrot.lane.b32.xlu1 %v4567_v12, %s4440_s29 }
 0x52c   :  { %v664_v32 = vpop.xlane.xlu1 %663 }
 0x52d   :  { %4362 = vrcp.f32 %v664_v32 }
 0x53a   :  { %v4363_v36 = vpop.eup %4362 }
 0x53b   :  { %v668_v37 = vmul.f32 %v4363_v36, %v4359_v26 }
 0x53c   :  { %v661_v39 = vpop.xlane.xlu1 %660 }
 0x53d   :  { %4364 = vrcp.f32 %v661_v39  ;;  %4107 = vmatmul.mubr.msk.f32.vlgmr.msra.gmra.mxu0 %vm154_vm2, %v668_v37 }
 0x53e   :  { %4116 = vmatpush3.bf16.msra.mxu0 %v876_v38  ;;  %4117 = vmatprep.mubr.msk.bf16.mxu0 %vm4431_vm0, %v4430_v0 }
 0x53f   :  { %4126 = vmatprep.subr.mxu0 %v4430_v0 }
 0x540   :  { %v670_v40 = vpop.permute.xlu1 %669 }
 0x541   :  { %4100 = vmatpush3.msra.mxu1 %v670_v40  ;;  %4118 = vmatmul.mubr.msk.bf16.vlgmr.msra.gmra.mxu0 %vm154_vm2, %v485_v11 }
 0x542   :  { %4128 = vmatprep.mubr.msk.f32.mxu0 %vm4431_vm0, %v4430_v0  ;;  %4109 = vmatprep.subr.bf16.mxu1 %v4430_v0 }
 0x544   :  { %v1000_v41 = vpop.permute.xlu1 %999 }
 0x545   :  { %4127 = vmatpush3.xpose.msk.msra.mxu0 %vm154_vm2, %v1000_v41 }
 0x546   :  { %4136 = vmatprep.subr.mxu0 %v4430_v0 }
 0x548   :  { %v998_v42 = vpop.permute.xlu1 %997 }
 0x549   :  { %4129 = vmatmul.mubr.msk.f32.vlgmr.msra.gmra.mxu0 %vm154_vm2, %v998_v42 }
 0x54a   :  { %v4365_v43 = vpop.eup %4364  ;;  %4138 = vmatprep.mubr.msk.f32.mxu0 %vm4431_vm0, %v4430_v0 }
 0x54b   :  { %v667_v44 = vmul.f32 %v4365_v43, %v4361_v30 }
 0x54c   :  { %v920_v63 = vpop.permute.xlu1 %919 }
 0x54d   :  { %4102 = vmatmul.mubr.msk.f32.vlgmr.msra.gmra.mxu1 %vm154_vm2, %v667_v44 }
 0x54e   :  { %4111 = vmatprep.mubr.msk.bf16.mxu1 %vm4431_vm0, %v4430_v0  ;;  %4110 = vmatpush3.bf16.msra.mxu1 %v829_v47 }
 0x54f   :  { %4121 = vmatprep.subr.mxu1 %v4430_v0 }
 0x550   :  { %v1308_v20 = vpop.permute.xlu1 %1307 }
 0x5fd   :  { %v817_v48 = vpop.f32.mrf.mxu0 }
 0x5ff   :  { %v4108_v49 = vpop.f32.mrf.mxu0 }
 0x601   :  { %v4676_v50 = vpop.f32.mrf.mxu0 }
 0x603   :  { %v4119_v51 = vpop.f32.mrf.mxu0 }
 0x604   :  { %v1253_v51 = vld [vmem:[%s5164_s4 + $0x10] sm:$0xff] }
 0x605   :  { %v4678_v52 = vpop.f32.mrf.mxu0 }
 0x607   :  { %v4120_v53 = vpop.f32.mrf.mxu0 }
 0x608   :  { %v1255_v53 = vpack.c.bf16 %v1253_v51, %v1253_v51 }
 0x609   :  { %v1071_v54 = vpop.f32.mrf.mxu0 }
 0x60a   :  { %v1076_v55 = vmul.f32 0.35355338, %v1071_v54  ;;  %v1260_v54 = vsel %vm827_vm3, %v1255_v53, 0 }
 0x60b   :  { %v4130_v56 = vpop.f32.mrf.mxu0 }
 0x60c   :  { %v1078_v57 = vadd.f32 %v1076_v55, %v4593_v35 }
 0x60d   :  { %v741_v58 = vpop.f32.mrf.mxu1 }
 0x60e   :  { %v822_v59 = vpack.c.bf16 %v817_v48, %v741_v58  ;;  %v1082_v60 = vsel %vm154_vm2, %v1078_v57, -inf }
 0x60f   :  { %v4103_v61 = vpop.f32.mrf.mxu1  ;;  %1083 = vmax.xlane.f32.xlu0 %v1082_v60 }
 0x610   :  { %4112 = vmatmul.mubr.msk.bf16.vlgmr.msra.gmra.mxu1 %vm154_vm2, %v822_v59 }
 0x611   :  { %4122 = vmatpush3.xpose.msk.msra.mxu1 %vm154_vm2, %v922_v62  ;;  %4123 = vmatprep.mubr.msk.f32.mxu1 %vm4431_vm0, %v4430_v0 }
 0x612   :  { %4131 = vmatprep.subr.mxu1 %v4430_v0 }
 0x618   :  { %4124 = vmatmul.mubr.msk.f32.vlgmr.msra.gmra.mxu1 %vm154_vm2, %v920_v63 }
 0x619   :  { %4133 = vmatprep.mubr.msk.f32.mxu1 %vm4431_vm0, %v4430_v0 }
 0x625   :  { %1177 = vrot.lane.b32.xlu0 %v4571_v15, %s5182_s19 }
 0x629   :  { %1305 = vrot.lane.b32.xlu0 %v4567_v12, %s5180_s20 }
 0x62d   :  { %1383 = vrot.lane.b32.xlu0 %v4571_v15, %s5180_s20 }
 0x698   :  { %v1084_v1 = vpop.xlane.xlu0 %1083 }
 0x699   :  { %v1086_v2 = vsub.f32 %v1078_v57, %v1084_v1 }
 0x69b   :  { %v1089_v3 = vmul.f32 1.442695, %v1086_v2 }
 0x69c   :  { %v1178_v4 = vpop.permute.xlu0 %1177 }
 0x69d   :  { %4366 = vpow2.f32 %v1089_v3  ;;  %4137 = vmatpush3.msra.mxu0 %v1178_v4 }
 0x69e   :  { %4147 = vmatprep.subr.mxu0 %v4430_v0 }
 0x6a0   :  { %v1306_v24 = vpop.permute.xlu0 %1305 }
 0x6a4   :  { %v1384_v26 = vpop.permute.xlu0 %1383 }
 0x6aa   :  { %v4367_v5 = vpop.eup %4366 }
 0x6ab   :  { %v1094_v6 = vsel %vm154_vm2, %v4367_v5, 0.0 }
 0x6ac   :  { %1095 = vadd.xlane.f32.xlu1 %v1094_v6 }
 0x6bd   :  { %1385 = vrot.lane.b32.xlu1 %v4571_v15, %s4440_s29 }
 0x6d0   :  { %v4700_v9 = vpop.f32.mrf.mxu1 }
 0x6d2   :  { %v4113_v10 = vpop.f32.mrf.mxu1 }
 0x6d4   :  { %v4702_v11 = vpop.f32.mrf.mxu1 }
 0x6d6   :  { %v4114_v13 = vpop.f32.mrf.mxu1 }
 0x6d8   :  { %v993_v14 = vpop.f32.mrf.mxu1 }
 0x6d9   :  { %v1075_v16 = vmul.f32 0.35355338, %v993_v14 }
 0x6da   :  { %v4125_v17 = vpop.f32.mrf.mxu1 }
 0x6db   :  { %v1077_v18 = vadd.f32 %v1075_v16, %v4590_v29  ;;  %v1639_v17 = vld [vmem:[%s5164_s4 + $0x18] sm:$0xff] }
 0x6dd   :  { %v1079_v19 = vsel %vm154_vm2, %v1077_v18, -inf }
 0x6e1   :  { %1080 = vmax.xlane.f32.xlu1 %v1079_v19 }
 0x735   :  { %v1096_v21 = vpop.xlane.xlu1 %1095 }
 0x736   :  { %4368 = vrcp.f32 %v1096_v21 }
 0x739   :  { %v1386_v25 = vpop.permute.xlu1 %1385 }
 0x743   :  { %v4369_v22 = vpop.eup %4368 }
 0x744   :  { %v1100_v23 = vmul.f32 %v4369_v22, %v4367_v5 }
 0x746   :  { %4139 = vmatmul.mubr.msk.f32.vlgmr.msra.gmra.mxu0 %vm154_vm2, %v1100_v23 }
 0x747   :  { %4148 = vmatpush3.xpose.msk.msra.mxu0 %vm154_vm2, %v1308_v20  ;;  %4149 = vmatprep.mubr.msk.f32.mxu0 %vm4431_vm0, %v4430_v0  ;;  %v913_v20 = vadd.f32 %v4676_v50, %v4700_v9  ;;  %v3876_v9 = vld [vmem:[%s5165_s5] ss:$0 sm:$0xff] }
 0x748   :  { %4152 = vmatprep.subr.mxu0 %v4430_v0 }
 0x74a   :  { %4150 = vmatmul.mubr.msk.f32.vlgmr.msra.gmra.mxu0 %vm154_vm2, %v1306_v24  ;;  %v916_v24 = vadd.f32 %v4678_v52, %v4702_v11 }
 0x74b   :  { %4153 = vmatpush3.xpose.msk.msra.mxu0 %vm154_vm2, %v1386_v25  ;;  %4154 = vmatprep.mubr.msk.f32.mxu0 %vm4431_vm0, %v4430_v0 }
 0x74c   :  { %4162 = vmatprep.subr.mxu0 %v4430_v0 }
 0x74e   :  { %4155 = vmatmul.mubr.msk.f32.vlgmr.msra.gmra.mxu0 %vm154_vm2, %v1384_v26 }
 0x74f   :  { %4164 = vmatprep.mubr.msk.f32.mxu0 %vm4431_vm0, %v4430_v0 }
 0x76a   :  { %v1081_v27 = vpop.xlane.xlu1 %1080 }
 0x76b   :  { %v1085_v28 = vsub.f32 %v1077_v18, %v1081_v27  ;;  %v1641_v18 = vpack.c.bf16 %v1639_v17, %v1639_v17 }
 0x76d   :  { %v1087_v30 = vmul.f32 1.442695, %v1085_v28  ;;  %v1646_v19 = vsel %vm827_vm3, %v1641_v18, 0 }
 0x76f   :  { %4370 = vpow2.f32 %v1087_v30 }
 0x77c   :  { %v4371_v31 = vpop.eup %4370 }
 0x77d   :  { %v1091_v32 = vsel %vm154_vm2, %v4371_v31, 0.0 }
 0x77e   :  { %1092 = vadd.xlane.f32.xlu0 %v1091_v32 }
 0x794   :  { %1101 = vrot.lane.b32.xlu0 %v4567_v12, %s5182_s19 }
 0x798   :  { %1563 = vrot.lane.b32.xlu0 %v4571_v15, %s5178_s21 }
 0x806   :  { %v1249_v33 = vpop.f32.mrf.mxu0 }
 0x807   :  { %v1093_v34 = vpop.xlane.xlu0 %1092 }
 0x808   :  { %4372 = vrcp.f32 %v1093_v34  ;;  %v4140_v36 = vpop.f32.mrf.mxu0 }
 0x80a   :  { %v1379_v37 = vpop.f32.mrf.mxu0 }
 0x80b   :  { %v1461_v38 = vmul.f32 0.35355338, %v1379_v37  ;;  %v1102_v39 = vpop.permute.xlu0 %1101 }
 0x80c   :  { %4132 = vmatpush3.msra.mxu1 %v1102_v39  ;;  %v4151_v40 = vpop.f32.mrf.mxu0 }
 0x80d   :  { %v1463_v41 = vadd.f32 %v1461_v38, %v4590_v29  ;;  %4141 = vmatprep.subr.bf16.mxu1 %v4430_v0 }
 0x80e   :  { %v1457_v42 = vpop.f32.mrf.mxu0 }
 0x80f   :  { %v1462_v43 = vmul.f32 0.35355338, %v1457_v42  ;;  %v1564_v44 = vpop.permute.xlu0 %1563  ;;  %v1465_v45 = vsel %vm154_vm2, %v1463_v41, -inf }
 0x810   :  { %4163 = vmatpush3.msra.mxu0 %v1564_v44  ;;  %1466 = vmax.xlane.f32.xlu1 %v1465_v45  ;;  %v4156_v15 = vpop.f32.mrf.mxu0 }
 0x811   :  { %v1464_v46 = vadd.f32 %v1462_v43, %v4593_v35  ;;  %4173 = vmatprep.subr.bf16.mxu0 %v4430_v0 }
 0x813   :  { %v1468_v47 = vsel %vm154_vm2, %v1464_v46, -inf }
 0x814   :  { %1469 = vmax.xlane.f32.xlu1 %v1468_v47 }
 0x815   :  { %v4373_v48 = vpop.eup %4372 }
 0x816   :  { %v1099_v49 = vmul.f32 %v4373_v48, %v4371_v31 }
 0x818   :  { %4134 = vmatmul.mubr.msk.f32.vlgmr.msra.gmra.mxu1 %vm154_vm2, %v1099_v49 }
 0x819   :  { %4143 = vmatprep.mubr.msk.bf16.mxu1 %vm4431_vm0, %v4430_v0  ;;  %4142 = vmatpush3.bf16.msra.mxu1 %v1260_v54  ;;  %v1750_v54 = vld [vmem:[%s5166_s8 + $0x18] sm:$0xff] }
 0x81a   :  { %4157 = vmatprep.subr.mxu1 %v4430_v0 }
 0x899   :  { %v1467_v55 = vpop.xlane.xlu1 %1466 }
 0x89a   :  { %v1471_v56 = vsub.f32 %v1463_v41, %v1467_v55 }
 0x89c   :  { %v1473_v57 = vmul.f32 1.442695, %v1471_v56  ;;  %v1747_v56 = vld [vmem:[%s5166_s8] sm:$0xff] }
 0x89d   :  { %v1470_v58 = vpop.xlane.xlu1 %1469 }
 0x89e   :  { %4374 = vpow2.f32 %v1473_v57  ;;  %v1472_v59 = vsub.f32 %v1464_v46, %v1470_v58  ;;  %v1748_v57 = vld [vmem:[%s5166_s8 + $0x8] sm:$0xff] }
 0x89f   :  { %v1752_v58 = vpack.c.bf16 %v1748_v57, %v1747_v56 }
 0x8a0   :  { %v1475_v60 = vmul.f32 1.442695, %v1472_v59  ;;  %v1813_v59 = vld [vmem:[%s5167_s10 + $0x30] sm:$0xff] }
 0x8a2   :  { %4376 = vpow2.f32 %v1475_v60  ;;  %v1814_v60 = vld [vmem:[%s5167_s10 + $0x38] sm:$0xff] }
 0x8ab   :  { %v4375_v61 = vpop.eup %4374 }
 0x8ac   :  { %v1477_v62 = vsel %vm154_vm2, %v4375_v61, 0.0 }
 0x8ad   :  { %1478 = vadd.xlane.f32.xlu1 %v1477_v62 }
 0x8af   :  { %v4377_v63 = vpop.eup %4376 }
 0x8b0   :  { %v1480_v1 = vsel %vm154_vm2, %v4377_v63, 0.0 }
 0x8b1   :  { %1481 = vadd.xlane.f32.xlu1 %v1480_v1 }
 0x8c2   :  { %1487 = vrot.lane.b32.xlu1 %v4567_v12, %s5178_s21 }
 0x8d8   :  { %v1173_v2 = vpop.f32.mrf.mxu1 }
 0x8d9   :  { %v1254_v3 = vpack.c.bf16 %v1249_v33, %v1173_v2 }
 0x8da   :  { %v4135_v4 = vpop.f32.mrf.mxu1 }
 0x8db   :  { %4144 = vmatmul.mubr.msk.bf16.vlgmr.msra.gmra.mxu1 %vm154_vm2, %v1254_v3 }
 0x8dc   :  { %4159 = vmatprep.mubr.msk.f32.mxu1 %vm4431_vm0, %v4430_v0 }
 0x936   :  { %v1479_v5 = vpop.xlane.xlu1 %1478 }
 0x937   :  { %4378 = vrcp.f32 %v1479_v5 }
 0x93a   :  { %v1482_v6 = vpop.xlane.xlu1 %1481 }
 0x93b   :  { %4380 = vrcp.f32 %v1482_v6 }
 0x93e   :  { %v1488_v10 = vpop.permute.xlu1 %1487 }
 0x93f   :  { %4158 = vmatpush3.msra.mxu1 %v1488_v10  ;;  %v3877_v10 = vld [vmem:[%s5168_s6] ss:$0 sm:$0xff] }
 0x940   :  { %4167 = vmatprep.subr.bf16.mxu1 %v4430_v0 }
 0x944   :  { %v4379_v13 = vpop.eup %4378 }
 0x945   :  { %v1485_v14 = vmul.f32 %v4379_v13, %v4375_v61  ;;  %v1819_v61 = vpack.c.bf16 %v1814_v60, %v1813_v59  ;;  %v3888_v59 = vld [vmem:[%s5185_s23 + $0x38] sm:$0xff] }
 0x947   :  { %4160 = vmatmul.mubr.msk.f32.vlgmr.msra.gmra.mxu1 %vm154_vm2, %v1485_v14 }
 0x948   :  { %v4381_v12 = vpop.eup %4380  ;;  %4169 = vmatprep.mubr.msk.bf16.mxu1 %vm4431_vm0, %v4430_v0  ;;  %4168 = vmatpush3.bf16.msra.mxu1 %v1646_v19 }
 0x949   :  { %v1486_v16 = vmul.f32 %v4381_v12, %v4377_v63  ;;  %4181 = vmatprep.subr.bf16.mxu1 %v4430_v0 }
 0x94b   :  { %4165 = vmatmul.mubr.msk.f32.vlgmr.msra.gmra.mxu0 %vm154_vm2, %v1486_v16  ;;  %v3878_v16 = vld [vmem:[%s5169_s7] ss:$0 sm:$0xff] }
 0x94c   :  { %4177 = vmatprep.mubr.msk.bf16.mxu0 %vm4431_vm0, %v4430_v0 }
 0x99b   :  { %v1296_v21 = vpop.f32.mrf.mxu1 }
 0x99c   :  { %v1303_v22 = vadd.f32 %v1296_v21, %v913_v20  ;;  %v1811_v21 = vld [vmem:[%s5167_s10 + $0x20] sm:$0xff] }
 0x99d   :  { %v4145_v23 = vpop.f32.mrf.mxu1 }
 0x99f   :  { %v1299_v25 = vpop.f32.mrf.mxu1 }
 0x9a0   :  { %v1304_v26 = vadd.f32 %v1299_v25, %v916_v24  ;;  %v1809_v24 = vld [vmem:[%s5167_s10 + $0x10] sm:$0xff]  ;;  %v1810_v25 = vld [vmem:[%s5167_s10 + $0x18] sm:$0xff] }
 0x9a1   :  { %v4146_v27 = vpop.f32.mrf.mxu1 }
 0x9a2   :  { %v1807_v27 = vld [vmem:[%s5167_s10] sm:$0xff] }
 0xa07   :  { %v1559_v28 = vpop.f32.mrf.mxu1 }
 0xa09   :  { %v4161_v30 = vpop.f32.mrf.mxu1 }
 0xa0b   :  { %v1635_v31 = vpop.f32.mrf.mxu0 }
 0xa0c   :  { %v1640_v32 = vpack.c.bf16 %v1635_v31, %v1559_v28  ;;  %v1808_v28 = vld [vmem:[%s5167_s10 + $0x8] sm:$0xff]  ;;  %v3879_v31 = vld [vmem:[%s5170_s9] ss:$0 sm:$0xff] }
 0xa0d   :  { %v4166_v33 = vpop.f32.mrf.mxu0  ;;  %v1816_v30 = vpack.c.bf16 %v1808_v28, %v1807_v27 }
 0xa0e   :  { %4170 = vmatmul.mubr.msk.bf16.vlgmr.msra.gmra.mxu1 %vm154_vm2, %v1640_v32 }
 0xa0f   :  { %4189 = vmatprep.mubr.msk.bf16.mxu1 %vm4431_vm0, %v4430_v0  ;;  %4182 = vmatpush3.bf16.msra.mxu1 %v1819_v61  ;;  %v3885_v61 = vld [vmem:[%s5185_s23 + $0x20] sm:$0xff] }
 0xa10   :  { %4183 = vmatprep.subr.bf16.mxu1 %v4430_v0 }
 0xace   :  { %v1682_v50 = vpop.f32.mrf.mxu1 }
 0xacf   :  { %v1689_v34 = vadd.f32 %v1682_v50, %v1303_v22  ;;  %v1812_v22 = vld [vmem:[%s5167_s10 + $0x28] sm:$0xff] }
 0xad0   :  { %v4171_v52 = vpop.f32.mrf.mxu1  ;;  %v1818_v23 = vpack.c.bf16 %v1812_v22, %v1811_v21 }
 0xad1   :  { %v1698_v11 = vadd.f32 %v3876_v9, %v1689_v34 }
 0xad2   :  { %v1685_v36 = vpop.f32.mrf.mxu1  ;;  %4184 = vmatpush3.bf16.msra.mxu1 %v1818_v23  ;;  %v3890_v23 = vld [vmem:[%s5162_s3 + $0x1] ss:$0 sm:$0xff] }
 0xad3   :  { %v1690_v37 = vadd.f32 %v1685_v36, %v1304_v26  ;;  %v1700_v38 = vadd.f32 %v1698_v11, %v4550_v7  ;;  %4185 = vmatprep.subr.bf16.mxu1 %v4430_v0  ;;  %v1817_v26 = vpack.c.bf16 %v1810_v25, %v1809_v24 }
 0xad4   :  { %v4172_v39 = vpop.f32.mrf.mxu1 }
 0xad5   :  { %v1699_v40 = vadd.f32 %v3876_v9, %v1690_v37  ;;  %v1704_v41 = vsel %vm106_vm1, %v1700_v38, 0.0 }
 0xad6   :  { %1705 = vadd.xlane.f32.xlu0 %v1704_v41  ;;  %4186 = vmatpush3.bf16.msra.mxu1 %v1817_v26 }
 0xad7   :  { %v1701_v42 = vadd.f32 %v1699_v40, %v4555_v8  ;;  %v1749_v8 = vld [vmem:[%s5166_s8 + $0x10] sm:$0xff]  ;;  %4187 = vmatprep.subr.bf16.mxu1 %v4430_v0 }
 0xad8   :  { %v1753_v55 = vpack.c.bf16 %v1750_v54, %v1749_v8 }
 0xad9   :  { %v1707_v43 = vsel %vm106_vm1, %v1701_v42, 0.0 }
 0xada   :  { %1708 = vadd.xlane.f32.xlu1 %v1707_v43  ;;  %4174 = vmatpush3.bf16.msra.mxu0 %v1753_v55 }
 0xadb   :  { %4175 = vmatprep.subr.bf16.mxu0 %v4430_v0  ;;  %4188 = vmatpush3.bf16.msra.mxu1 %v1816_v30 }
 0xadc   :  { %4206 = vmatprep.subr.mxu1 %v4430_v0 }
 0xade   :  { %4176 = vmatpush3.bf16.msra.mxu0 %v1752_v58  ;;  %v3887_v58 = vld [vmem:[%s5185_s23 + $0x30] sm:$0xff] }
 0xadf   :  { %4193 = vmatprep.subr.bf16.mxu0 %v4430_v0  ;;  %v1925_v60 = vpack.c.bf16 %v3888_v59, %v3887_v58 }
 0xb5f   :  { %v1706_v44 = vpop.xlane.xlu0 %1705 }
 0xb60   :  { %v1711_v45 = vmul.f32 0.03125, %v1706_v44 }
 0xb62   :  { %v1713_v15 = vsub.f32 %v1700_v38, %v1711_v45  ;;  %v3881_v38 = vld [vmem:[%s5171_s11] ss:$0 sm:$0xff] }
 0xb63   :  { %v1709_v46 = vpop.xlane.xlu1 %1708 }
 0xb64   :  { %v1712_v47 = vmul.f32 0.03125, %v1709_v46  ;;  %v1715_v48 = vmul.f32 %v1713_v15, %v1713_v15 }
 0xb66   :  { %v1714_v49 = vsub.f32 %v1701_v42, %v1712_v47  ;;  %v1717_v51 = vsel %vm106_vm1, %v1715_v48, 0.0 }
 0xb67   :  { %1718 = vadd.xlane.f32.xlu0 %v1717_v51 }
 0xb68   :  { %v1716_v7 = vmul.f32 %v1714_v49, %v1714_v49 }
 0xb6a   :  { %v1720_v53 = vsel %vm106_vm1, %v1716_v7, 0.0 }
 0xb6b   :  { %1721 = vadd.xlane.f32.xlu0 %v1720_v53 }
 0xbf0   :  { %v1719_v62 = vpop.xlane.xlu0 %1718 }
 0xbf1   :  { %v1723_v63 = vmul.f32 0.03125, %v1719_v62  ;;  %v3886_v62 = vld [vmem:[%s5185_s23 + $0x28] sm:$0xff] }
 0xbf3   :  { %v1725_v1 = vadd.f32 1e-05, %v1723_v63  ;;  %v1924_v63 = vpack.c.bf16 %v3886_v62, %v3885_v61 }
 0xbf4   :  { %v1722_v2 = vpop.xlane.xlu0 %1721 }
 0xbf5   :  { %4382 = vrsqrt.f32 %v1725_v1  ;;  %v1724_v3 = vmul.f32 0.03125, %v1722_v2 }
 0xbf7   :  { %v1726_v4 = vadd.f32 1e-05, %v1724_v3 }
 0xbf9   :  { %4384 = vrsqrt.f32 %v1726_v4 }
 0xc02   :  { %v4383_v5 = vpop.eup %4382 }
 0xc03   :  { %v1729_v6 = vmul.f32 %v4383_v5, %v1713_v15 }
 0xc05   :  { %v1737_v12 = vmul.f32 %v3877_v10, %v1729_v6 }
 0xc06   :  { %v4385_v13 = vpop.eup %4384 }
 0xc07   :  { %v1730_v14 = vmul.f32 %v4385_v13, %v1714_v49  ;;  %v1745_v18 = vadd.f32 %v3878_v16, %v1737_v12 }
 0xc09   :  { %v1738_v17 = vmul.f32 %v3877_v10, %v1730_v14  ;;  %v3883_v14 = vld [vmem:[%s5172_s12] ss:$0 sm:$0xff] }
 0xc0b   :  { %v1746_v19 = vadd.f32 %v3878_v16, %v1738_v17 }
 0xc0d   :  { %v1751_v20 = vpack.c.bf16 %v1746_v19, %v1745_v18 }
 0xc0f   :  { %4178 = vmatmul.mubr.msk.bf16.vlgmr.msra.gmra.mxu0 %vm106_vm1, %v1751_v20 }
 0xc10   :  { %4197 = vmatprep.mubr.msk.bf16.mxu0 %vm4431_vm0, %v4430_v0  ;;  %4194 = vmatpush3.bf16.msra.mxu0 %v1925_v60 }
 0xc11   :  { %4195 = vmatprep.subr.bf16.mxu0 %v4430_v0 }
 0xc14   :  { %4196 = vmatpush3.bf16.msra.mxu0 %v1924_v63 }
 0xc15   :  { %4201 = vmatprep.subr.mxu0 %v4430_v0 }
 0xccf   :  { %v1798_v32 = vpop.f32.mrf.mxu0 }
 0xcd0   :  { %v1799_v50 = vadd.f32 %v3879_v31, %v1798_v32 }
 0xcd1   :  { %v4179_v33 = vpop.f32.mrf.mxu0 }
 0xcd2   :  { %v1805_v11 = vmax.f32 %v1799_v50, 0.0 }
 0xcd3   :  { %v1801_v9 = vpop.f32.mrf.mxu0 }
 0xcd4   :  { %v1802_v34 = vadd.f32 %v3879_v31, %v1801_v9 }
 0xcd5   :  { %v4180_v52 = vpop.f32.mrf.mxu0 }
 0xcd6   :  { %v1806_v36 = vmax.f32 %v1802_v34, 0.0 }
 0xcd8   :  { %v1815_v37 = vpack.c.bf16 %v1806_v36, %v1805_v11 }
 0xcda   :  { %4190 = vmatmul.mubr.msk.bf16.vlgmr.msra.gmra.mxu1 %vm1827_vm4, %v1815_v37 }
 0xcdb   :  { %4208 = vmatprep.mubr.msk.f32.mxu1 %vm4431_vm0, %v4430_v0 }
 0xd9a   :  { %v1865_v39 = vpop.f32.mrf.mxu1 }
 0xd9b   :  { %v1866_v40 = vadd.f32 %v3881_v38, %v1865_v39 }
 0xd9c   :  { %v4191_v41 = vpop.f32.mrf.mxu1 }
 0xd9d   :  { %v1872_v42 = vadd.f32 %v1866_v40, %v1745_v18  ;;  %v3884_v18 = vld [vmem:[%s5173_s13] ss:$0 sm:$0xff] }
 0xd9e   :  { %v1868_v43 = vpop.f32.mrf.mxu1 }
 0xd9f   :  { %v1869_v44 = vadd.f32 %v3881_v38, %v1868_v43  ;;  %v1876_v45 = vsel %vm106_vm1, %v1872_v42, 0.0 }
 0xda0   :  { %1877 = vadd.xlane.f32.xlu0 %v1876_v45  ;;  %v4192_v15 = vpop.f32.mrf.mxu1 }
 0xda1   :  { %v1873_v46 = vadd.f32 %v1869_v44, %v1746_v19 }
 0xda3   :  { %v1879_v47 = vsel %vm106_vm1, %v1873_v46, 0.0 }
 0xda4   :  { %1880 = vadd.xlane.f32.xlu0 %v1879_v47 }
 0xe29   :  { %v1878_v48 = vpop.xlane.xlu0 %1877 }
 0xe2a   :  { %v1882_v49 = vmul.f32 0.03125, %v1878_v48 }
 0xe2c   :  { %v1884_v51 = vsub.f32 %v1872_v42, %v1882_v49 }
 0xe2d   :  { %v1881_v7 = vpop.xlane.xlu0 %1880 }
 0xe2e   :  { %v1883_v53 = vmul.f32 0.03125, %v1881_v7  ;;  %v1886_v8 = vmul.f32 %v1884_v51, %v1884_v51 }
 0xe30   :  { %v1885_v54 = vsub.f32 %v1873_v46, %v1883_v53  ;;  %v1888_v55 = vsel %vm106_vm1, %v1886_v8, 0.0 }
 0xe31   :  { %1889 = vadd.xlane.f32.xlu1 %v1888_v55 }
 0xe32   :  { %v1887_v56 = vmul.f32 %v1885_v54, %v1885_v54 }
 0xe34   :  { %v1891_v57 = vsel %vm106_vm1, %v1887_v56, 0.0 }
 0xe35   :  { %1892 = vadd.xlane.f32.xlu0 %v1891_v57 }
 0xeba   :  { %v1890_v1 = vpop.xlane.xlu1 %1889 }
 0xebb   :  { %v1894_v2 = vmul.f32 0.03125, %v1890_v1 }
 0xebd   :  { %v1896_v3 = vadd.f32 1e-05, %v1894_v2 }
 0xebe   :  { %v1893_v4 = vpop.xlane.xlu0 %1892 }
 0xebf   :  { %4386 = vrsqrt.f32 %v1896_v3  ;;  %v1895_v5 = vmul.f32 0.03125, %v1893_v4 }
 0xec1   :  { %v1897_v6 = vadd.f32 1e-05, %v1895_v5 }
 0xec3   :  { %4388 = vrsqrt.f32 %v1897_v6 }
 0xecc   :  { %v4387_v10 = vpop.eup %4386 }
 0xecd   :  { %v1900_v13 = vmul.f32 %v4387_v10, %v1884_v51 }
 0xecf   :  { %v1908_v17 = vmul.f32 %v3883_v14, %v1900_v13 }
 0xed0   :  { %v4389_v12 = vpop.eup %4388 }
 0xed1   :  { %v1901_v16 = vmul.f32 %v4389_v12, %v1885_v54  ;;  %v4857_v20 = vadd.f32 %v3884_v18, %v1908_v17 }
 0xed3   :  { %v1909_v19 = vmul.f32 %v3883_v14, %v1901_v16 }
 0xed5   :  { %v4859_v21 = vadd.f32 %v3884_v18, %v1909_v19 }
 0xed7   :  { %v1923_v22 = vpack.c.bf16 %v4859_v21, %v4857_v20 }
 0xed9   :  { %4198 = vmatmul.mubr.msk.bf16.vlgmr.msra.gmra.mxu0 %vm106_vm1, %v1923_v22 }
 0xeda   :  { %4203 = vmatprep.mubr.msk.f32.mxu0 %vm4431_vm0, %v4430_v0 }
 0xf99   :  { %v1971_v24 = vpop.f32.mrf.mxu0 }
 0xf9a   :  { %v4869_v25 = vadd.f32 %v3890_v23, %v1971_v24 }
 0xf9b   :  { %v4199_v26 = vpop.f32.mrf.mxu0 }
 0xf9c   :  { %1979 = vrot.lane.b32.xlu1 %v4869_v25, %s4432_s0 }
 0xf9d   :  { %v1974_v27 = vpop.f32.mrf.mxu0 }
 0xf9e   :  { %v4873_v28 = vadd.f32 %v3890_v23, %v1974_v27 }
 0xf9f   :  { %v4200_v30 = vpop.f32.mrf.mxu0 }
 0xfa0   :  { %2056 = vrot.lane.b32.xlu0 %v4873_v28, %s4432_s0 }
0x100e   :  { %v1980_v31 = vpop.permute.xlu1 %1979 }
0x100f   :  { %4202 = vmatpush3.xpose.msk.msra.mxu0 %vm154_vm2, %v1980_v31 }
0x1010   :  { %4211 = vmatprep.subr.mxu0 %v4430_v0 }
0x1012   :  { %4204 = vmatmul.mubr.msk.f32.vlgmr.msra.gmra.mxu0 %vm154_vm2, %v4869_v25  ;;  %v2057_v32 = vpop.permute.xlu0 %2056 }
0x1013   :  { %4207 = vmatpush3.xpose.msk.msra.mxu1 %vm154_vm2, %v2057_v32  ;;  %4213 = vmatprep.mubr.msk.f32.mxu0 %vm4431_vm0, %v4430_v0 }
0x1014   :  { %4216 = vmatprep.subr.mxu1 %v4430_v0 }
0x1016   :  { %4209 = vmatmul.mubr.msk.f32.vlgmr.msra.gmra.mxu1 %vm154_vm2, %v4873_v28 }
0x1017   :  { %4218 = vmatprep.mubr.msk.f32.mxu1 %vm4431_vm0, %v4430_v0 }
0x10d2   :  { %v2051_v33 = vpop.f32.mrf.mxu0 }
0x10d3   :  { %v2132_v50 = vmul.f32 0.35355338, %v2051_v33 }
0x10d4   :  { %v4205_v9 = vpop.f32.mrf.mxu0 }
0x10d5   :  { %v2134_v34 = vadd.f32 %v2132_v50, %v4590_v29 }
0x10d6   :  { %v2128_v52 = vpop.f32.mrf.mxu1 }
0x10d7   :  { %v2133_v11 = vmul.f32 0.35355338, %v2128_v52  ;;  %v2136_v36 = vsel %vm154_vm2, %v2134_v34, -inf  ;;  %v3898_v52 = vld [vmem:[%s5164_s4 + $0x20] sm:$0xff] }
0x10d8   :  { %v4210_v37 = vpop.f32.mrf.mxu1  ;;  %2137 = vmax.xlane.f32.xlu1 %v2136_v36 }
0x10d9   :  { %v2135_v38 = vadd.f32 %v2133_v11, %v4593_v35  ;;  %v2313_v37 = vpack.c.bf16 %v3898_v52, %v3898_v52 }
0x10db   :  { %v2139_v39 = vsel %vm154_vm2, %v2135_v38, -inf }
0x10dc   :  { %2140 = vmax.xlane.f32.xlu0 %v2139_v39 }
0x10e9   :  { %2158 = vrot.lane.b32.xlu1 %v4869_v25, %s4434_s1 }
0x1161   :  { %v2138_v40 = vpop.xlane.xlu1 %2137 }
0x1162   :  { %v2142_v41 = vsub.f32 %v2134_v34, %v2138_v40  ;;  %v2702_v40 = vsel %vm827_vm3, %v2313_v37, 0 }
0x1164   :  { %v2144_v42 = vmul.f32 1.442695, %v2142_v41 }
0x1165   :  { %v2141_v43 = vpop.xlane.xlu0 %2140  ;;  %v2159_v44 = vpop.permute.xlu1 %2158 }
0x1166   :  { %4390 = vpow2.f32 %v2144_v42  ;;  %v2143_v45 = vsub.f32 %v2135_v38, %v2141_v43  ;;  %4212 = vmatpush3.msra.mxu0 %v2159_v44  ;;  %v3905_v43 = vld [vmem:[%s5164_s4 + $0x28] sm:$0xff] }
0x1167   :  { %4221 = vmatprep.subr.mxu0 %v4430_v0  ;;  %v2650_v44 = vpack.c.bf16 %v3905_v43, %v3905_v43 }
0x1168   :  { %v2146_v15 = vmul.f32 1.442695, %v2143_v45 }
0x1169   :  { %v2655_v45 = vsel %vm827_vm3, %v2650_v44, 0 }
0x116a   :  { %4392 = vpow2.f32 %v2146_v15 }
0x1173   :  { %v4391_v46 = vpop.eup %4390 }
0x1174   :  { %v2148_v47 = vsel %vm154_vm2, %v4391_v46, 0.0 }
0x1175   :  { %2149 = vadd.xlane.f32.xlu1 %v2148_v47 }
0x1177   :  { %v4393_v48 = vpop.eup %4392 }
0x1178   :  { %v2151_v49 = vsel %vm154_vm2, %v4393_v48, 0.0 }
0x1179   :  { %2152 = vadd.xlane.f32.xlu0 %v2151_v49 }
0x1186   :  { %2316 = vrot.lane.b32.xlu1 %v4869_v25, %s4435_s24 }
0x118a   :  { %2394 = vrot.lane.b32.xlu1 %v4873_v28, %s4435_s24 }
0x118e   :  { %2392 = vrot.lane.b32.xlu1 %v4873_v28, %s4436_s25 }
0x118f   :  { %2234 = vrot.lane.b32.xlu0 %v4873_v28, %s4434_s1 }
0x1193   :  { %2314 = vrot.lane.b32.xlu0 %v4869_v25, %s4436_s25  ;;  %s5186_s25 = smov 48  }
0x11fe   :  { %v2150_v51 = vpop.xlane.xlu1 %2149 }
0x11ff   :  { %4394 = vrcp.f32 %v2150_v51 }
0x1202   :  { %v2153_v7 = vpop.xlane.xlu0 %2152  ;;  %v2317_v8 = vpop.permute.xlu1 %2316 }
0x1203   :  { %4396 = vrcp.f32 %v2153_v7 }
0x1206   :  { %v2235_v53 = vpop.permute.xlu0 %2234  ;;  %v2395_v57 = vpop.permute.xlu1 %2394 }
0x1207   :  { %4217 = vmatpush3.msra.mxu1 %v2235_v53 }
0x1208   :  { %4226 = vmatprep.subr.mxu1 %v4430_v0 }
0x120a   :  { %v2315_v59 = vpop.permute.xlu0 %2314  ;;  %v2393_v60 = vpop.permute.xlu1 %2392 }
0x120c   :  { %v4395_v54 = vpop.eup %4394 }
0x120d   :  { %v2156_v55 = vmul.f32 %v4395_v54, %v4391_v46 }
0x120f   :  { %4214 = vmatmul.mubr.msk.f32.vlgmr.msra.gmra.mxu0 %vm154_vm2, %v2156_v55 }
0x1210   :  { %v4397_v56 = vpop.eup %4396  ;;  %4222 = vmatpush3.xpose.msk.msra.mxu0 %vm154_vm2, %v2317_v8  ;;  %4223 = vmatprep.mubr.msk.f32.mxu0 %vm4431_vm0, %v4430_v0 }
0x1211   :  { %v2157_v58 = vmul.f32 %v4397_v56, %v4393_v48  ;;  %4231 = vmatprep.subr.mxu0 %v4430_v0 }
0x1213   :  { %4219 = vmatmul.mubr.msk.f32.vlgmr.msra.gmra.mxu1 %vm154_vm2, %v2157_v58  ;;  %4224 = vmatmul.mubr.msk.f32.vlgmr.msra.gmra.mxu0 %vm154_vm2, %v2315_v59 }
0x1214   :  { %4227 = vmatpush3.xpose.msk.msra.mxu1 %vm154_vm2, %v2395_v57  ;;  %4228 = vmatprep.mubr.msk.f32.mxu1 %vm4431_vm0, %v4430_v0 }
0x1215   :  { %4236 = vmatprep.subr.mxu1 %v4430_v0  ;;  %4233 = vmatprep.mubr.msk.f32.mxu0 %vm4431_vm0, %v4430_v0 }
0x1217   :  { %4229 = vmatmul.mubr.msk.f32.vlgmr.msra.gmra.mxu1 %vm154_vm2, %v2393_v60 }
0x1218   :  { %4238 = vmatprep.mubr.msk.f32.mxu1 %vm4431_vm0, %v4430_v0 }
0x12cf   :  { %v4925_v61 = vpop.f32.mrf.mxu0 }
0x12d1   :  { %v4215_v62 = vpop.f32.mrf.mxu0 }
0x12d3   :  { %v2306_v63 = vpop.f32.mrf.mxu1  ;;  %v2388_v1 = vpop.f32.mrf.mxu0 }
0x12d4   :  { %v2312_v2 = vpack.c.bf16 %v2306_v63, %v4925_v61  ;;  %v2470_v3 = vmul.f32 0.35355338, %v2388_v1 }
0x12d5   :  { %v4220_v4 = vpop.f32.mrf.mxu1  ;;  %v4225_v5 = vpop.f32.mrf.mxu0 }
0x12d6   :  { %v2472_v6 = vadd.f32 %v2470_v3, %v4590_v29 }
0x12d7   :  { %v2466_v10 = vpop.f32.mrf.mxu1 }
0x12d8   :  { %v2471_v13 = vmul.f32 0.35355338, %v2466_v10  ;;  %v2474_v14 = vsel %vm154_vm2, %v2472_v6, -inf }
0x12d9   :  { %v4230_v12 = vpop.f32.mrf.mxu1  ;;  %2475 = vmax.xlane.f32.xlu0 %v2474_v14 }
0x12da   :  { %v2473_v16 = vadd.f32 %v2471_v13, %v4593_v35 }
0x12dc   :  { %v2477_v17 = vsel %vm154_vm2, %v2473_v16, -inf }
0x12dd   :  { %2478 = vmax.xlane.f32.xlu1 %v2477_v17 }
0x12ee   :  { %2496 = vrot.lane.b32.xlu1 %v4869_v25, %s4437_s26 }
0x12f2   :  { %2825 = vrot.lane.b32.xlu1 %v4873_v28, %s4438_s27 }
0x12f6   :  { %2823 = vrot.lane.b32.xlu1 %v4873_v28, %s4439_s28 }
0x12fa   :  { %2745 = vrot.lane.b32.xlu1 %v4869_v25, %s4439_s28 }
0x12fe   :  { %3133 = vrot.lane.b32.xlu1 %v4869_v25, %s4440_s29 }
0x1362   :  { %v2476_v18 = vpop.xlane.xlu0 %2475 }
0x1363   :  { %v2480_v19 = vsub.f32 %v2472_v6, %v2476_v18 }
0x1365   :  { %v2482_v22 = vmul.f32 1.442695, %v2480_v19 }
0x1366   :  { %v2479_v23 = vpop.xlane.xlu1 %2478 }
0x1367   :  { %4398 = vpow2.f32 %v2482_v22  ;;  %v2481_v24 = vsub.f32 %v2473_v16, %v2479_v23 }
0x1369   :  { %v2484_v26 = vmul.f32 1.442695, %v2481_v24 }
0x136a   :  { %v2497_v27 = vpop.permute.xlu1 %2496 }
0x136b   :  { %4400 = vpow2.f32 %v2484_v26  ;;  %4232 = vmatpush3.msra.mxu0 %v2497_v27 }
0x136c   :  { %4241 = vmatprep.subr.bf16.mxu0 %v4430_v0 }
0x136e   :  { %v2826_v41 = vpop.permute.xlu1 %2825 }
0x1372   :  { %v2824_v42 = vpop.permute.xlu1 %2823 }
0x1374   :  { %v4399_v30 = vpop.eup %4398 }
0x1375   :  { %v2486_v31 = vsel %vm154_vm2, %v4399_v30, 0.0 }
0x1376   :  { %2487 = vadd.xlane.f32.xlu0 %v2486_v31  ;;  %v2746_v54 = vpop.permute.xlu1 %2745 }
0x1378   :  { %v4401_v32 = vpop.eup %4400 }
0x1379   :  { %v2489_v33 = vsel %vm154_vm2, %v4401_v32, 0.0 }
0x137a   :  { %2490 = vadd.xlane.f32.xlu0 %v2489_v33  ;;  %v3134_v18 = vpop.permute.xlu1 %3133 }
0x1390   :  { %2572 = vrot.lane.b32.xlu0 %v4873_v28, %s4437_s26  ;;  %s5187_s26 = smov 104  }
0x1394   :  { %2747 = vrot.lane.b32.xlu0 %v4869_v25, %s4438_s27  ;;  %s5188_s27 = smov 40  }
0x13ff   :  { %v2488_v50 = vpop.xlane.xlu0 %2487 }
0x1400   :  { %4402 = vrcp.f32 %v2488_v50 }
0x1403   :  { %v2491_v9 = vpop.xlane.xlu0 %2490 }
0x1404   :  { %4404 = vrcp.f32 %v2491_v9 }
0x1407   :  { %v2573_v34 = vpop.permute.xlu0 %2572 }
0x1408   :  { %4237 = vmatpush3.msra.mxu1 %v2573_v34 }
0x1409   :  { %4247 = vmatprep.subr.bf16.mxu1 %v4430_v0 }
0x140b   :  { %v2748_v51 = vpop.permute.xlu0 %2747 }
0x140d   :  { %v4403_v11 = vpop.eup %4402 }
0x140e   :  { %v2494_v36 = vmul.f32 %v4403_v11, %v4399_v30 }
0x1410   :  { %4234 = vmatmul.mubr.msk.f32.vlgmr.msra.gmra.mxu0 %vm154_vm2, %v2494_v36 }
0x1411   :  { %v4405_v38 = vpop.eup %4404  ;;  %4243 = vmatprep.mubr.msk.bf16.mxu0 %vm4431_vm0, %v4430_v0  ;;  %4242 = vmatpush3.bf16.msra.mxu0 %v2655_v45 }
0x1412   :  { %v2495_v39 = vmul.f32 %v4405_v38, %v4401_v32  ;;  %4253 = vmatprep.subr.mxu0 %v4430_v0 }
0x1414   :  { %4239 = vmatmul.mubr.msk.f32.vlgmr.msra.gmra.mxu1 %vm154_vm2, %v2495_v39 }
0x1415   :  { %4248 = vmatpush3.bf16.msra.mxu1 %v2702_v40  ;;  %4249 = vmatprep.mubr.msk.bf16.mxu1 %vm4431_vm0, %v4430_v0 }
0x1416   :  { %4258 = vmatprep.subr.mxu1 %v4430_v0 }
0x1418   :  { %4250 = vmatmul.mubr.msk.bf16.vlgmr.msra.gmra.mxu1 %vm154_vm2, %v2312_v2 }
0x1419   :  { %4259 = vmatpush3.xpose.msk.msra.mxu1 %vm154_vm2, %v2826_v41  ;;  %4260 = vmatprep.mubr.msk.f32.mxu1 %vm4431_vm0, %v4430_v0 }
0x141a   :  { %4268 = vmatprep.subr.mxu1 %v4430_v0 }
0x1420   :  { %4261 = vmatmul.mubr.msk.f32.vlgmr.msra.gmra.mxu1 %vm154_vm2, %v2824_v42 }
0x1421   :  { %4270 = vmatprep.mubr.msk.f32.mxu1 %vm4431_vm0, %v4430_v0 }
0x14d0   :  { %v2568_v15 = vpop.f32.mrf.mxu0 }
0x14d2   :  { %v4235_v46 = vpop.f32.mrf.mxu0 }
0x14d4   :  { %v2644_v47 = vpop.f32.mrf.mxu1 }
0x14d5   :  { %v2649_v48 = vpack.c.bf16 %v2644_v47, %v2568_v15 }
0x14d6   :  { %v4240_v49 = vpop.f32.mrf.mxu1 }
0x14d7   :  { %4244 = vmatmul.mubr.msk.bf16.vlgmr.msra.gmra.mxu0 %vm154_vm2, %v2649_v48 }
0x14d8   :  { %4254 = vmatpush3.xpose.msk.msra.mxu0 %vm154_vm2, %v2748_v51  ;;  %v4976_v7 = vpop.f32.mrf.mxu1  ;;  %4255 = vmatprep.mubr.msk.f32.mxu0 %vm4431_vm0, %v4430_v0 }
0x14d9   :  { %4263 = vmatprep.subr.mxu0 %v4430_v0 }
0x14da   :  { %v4251_v53 = vpop.f32.mrf.mxu1 }
0x14dc   :  { %v4981_v8 = vpop.f32.mrf.mxu1 }
0x14de   :  { %v4252_v55 = vpop.f32.mrf.mxu1 }
0x14df   :  { %4256 = vmatmul.mubr.msk.f32.vlgmr.msra.gmra.mxu0 %vm154_vm2, %v2746_v54 }
0x14e0   :  { %v2897_v56 = vpop.f32.mrf.mxu1  ;;  %4265 = vmatprep.mubr.msk.f32.mxu0 %vm4431_vm0, %v4430_v0 }
0x14e1   :  { %v2902_v57 = vmul.f32 0.35355338, %v2897_v56 }
0x14e2   :  { %v4262_v58 = vpop.f32.mrf.mxu1 }
0x14e3   :  { %v2904_v59 = vadd.f32 %v2902_v57, %v4593_v35 }
0x14e5   :  { %v2908_v60 = vsel %vm154_vm2, %v2904_v59, -inf }
0x14e6   :  { %2909 = vmax.xlane.f32.xlu0 %v2908_v60 }
0x14fc   :  { %3003 = vrot.lane.b32.xlu0 %v4873_v28, %s5186_s25 }
0x1500   :  { %3131 = vrot.lane.b32.xlu0 %v4869_v25, %s5187_s26 }
0x1504   :  { %3209 = vrot.lane.b32.xlu0 %v4873_v28, %s5187_s26 }
0x156f   :  { %v2910_v61 = vpop.xlane.xlu0 %2909 }
0x1570   :  { %v2912_v62 = vsub.f32 %v2904_v59, %v2910_v61 }
0x1572   :  { %v2915_v63 = vmul.f32 1.442695, %v2912_v62 }
0x1573   :  { %v3004_v1 = vpop.permute.xlu0 %3003 }
0x1574   :  { %4406 = vpow2.f32 %v2915_v63  ;;  %4269 = vmatpush3.msra.mxu1 %v3004_v1 }
0x1575   :  { %4279 = vmatprep.subr.mxu1 %v4430_v0 }
0x1577   :  { %v3132_v24 = vpop.permute.xlu0 %3131 }
0x157b   :  { %v3210_v27 = vpop.permute.xlu0 %3209 }
0x1581   :  { %v4407_v2 = vpop.eup %4406 }
0x1582   :  { %v2920_v3 = vsel %vm154_vm2, %v4407_v2, 0.0 }
0x1583   :  { %2921 = vadd.xlane.f32.xlu1 %v2920_v3 }
0x1594   :  { %3211 = vrot.lane.b32.xlu1 %v4873_v28, %s4440_s29 }
0x1597   :  { %v4998_v4 = vpop.f32.mrf.mxu0 }
0x1599   :  { %v4245_v5 = vpop.f32.mrf.mxu0 }
0x159b   :  { %v5000_v6 = vpop.f32.mrf.mxu0 }
0x159d   :  { %v4246_v10 = vpop.f32.mrf.mxu0 }
0x159f   :  { %v2819_v13 = vpop.f32.mrf.mxu0 }
0x15a0   :  { %v2901_v12 = vmul.f32 0.35355338, %v2819_v13  ;;  %v3922_v13 = vld [vmem:[%s5164_s4 + $0x38] sm:$0xff] }
0x15a1   :  { %v4257_v14 = vpop.f32.mrf.mxu0 }
0x15a2   :  { %v2903_v16 = vadd.f32 %v2901_v12, %v4590_v29  ;;  %v3467_v14 = vpack.c.bf16 %v3922_v13, %v3922_v13 }
0x15a4   :  { %v2905_v17 = vsel %vm154_vm2, %v2903_v16, -inf  ;;  %v3472_v12 = vsel %vm827_vm3, %v3467_v14, 0 }
0x15b8   :  { %2906 = vmax.xlane.f32.xlu1 %v2905_v17 }
0x160c   :  { %v2922_v19 = vpop.xlane.xlu1 %2921 }
0x160d   :  { %4408 = vrcp.f32 %v2922_v19 }
0x1610   :  { %v3212_v26 = vpop.permute.xlu1 %3211 }
0x161a   :  { %v4409_v22 = vpop.eup %4408 }
0x161b   :  { %v2926_v23 = vmul.f32 %v4409_v22, %v4407_v2  ;;  %v2742_v22 = vadd.f32 %v4981_v8, %v5000_v6 }
0x161d   :  { %4271 = vmatmul.mubr.msk.f32.vlgmr.msra.gmra.mxu1 %vm154_vm2, %v2926_v23 }
0x161e   :  { %4280 = vmatpush3.xpose.msk.msra.mxu1 %vm154_vm2, %v3134_v18  ;;  %4281 = vmatprep.mubr.msk.f32.mxu1 %vm4431_vm0, %v4430_v0 }
0x161f   :  { %4284 = vmatprep.subr.mxu1 %v4430_v0 }
0x1621   :  { %4282 = vmatmul.mubr.msk.f32.vlgmr.msra.gmra.mxu1 %vm154_vm2, %v3132_v24 }
0x1622   :  { %4285 = vmatpush3.xpose.msk.msra.mxu1 %vm154_vm2, %v3212_v26  ;;  %4286 = vmatprep.mubr.msk.f32.mxu1 %vm4431_vm0, %v4430_v0 }
0x1623   :  { %4294 = vmatprep.subr.mxu1 %v4430_v0 }
0x1625   :  { %4287 = vmatmul.mubr.msk.f32.vlgmr.msra.gmra.mxu1 %vm154_vm2, %v3210_v27 }
0x1626   :  { %4296 = vmatprep.mubr.msk.f32.mxu1 %vm4431_vm0, %v4430_v0 }
0x1641   :  { %v2907_v30 = vpop.xlane.xlu1 %2906 }
0x1642   :  { %v2911_v31 = vsub.f32 %v2903_v16, %v2907_v30  ;;  %v2739_v16 = vadd.f32 %v4976_v7, %v4998_v4  ;;  %v3925_v4 = vld [vmem:[%s5165_s5 + $0x1] ss:$0 sm:$0xff] }
0x1644   :  { %v2913_v32 = vmul.f32 1.442695, %v2911_v31 }
0x1646   :  { %4410 = vpow2.f32 %v2913_v32 }
0x1653   :  { %v4411_v33 = vpop.eup %4410 }
0x1654   :  { %v2917_v50 = vsel %vm154_vm2, %v4411_v33, 0.0 }
0x1655   :  { %2918 = vadd.xlane.f32.xlu0 %v2917_v50 }
0x166b   :  { %2927 = vrot.lane.b32.xlu0 %v4869_v25, %s5186_s25 }
0x166f   :  { %3389 = vrot.lane.b32.xlu0 %v4873_v28, %s5188_s27 }
0x16dd   :  { %v3075_v9 = vpop.f32.mrf.mxu1 }
0x16de   :  { %v2919_v34 = vpop.xlane.xlu0 %2918 }
0x16df   :  { %4412 = vrcp.f32 %v2919_v34  ;;  %v4272_v52 = vpop.f32.mrf.mxu1 }
0x16e1   :  { %v3205_v11 = vpop.f32.mrf.mxu1 }
0x16e2   :  { %v3287_v36 = vmul.f32 0.35355338, %v3205_v11  ;;  %v2928_v37 = vpop.permute.xlu0 %2927 }
0x16e3   :  { %4264 = vmatpush3.msra.mxu0 %v2928_v37  ;;  %v4283_v38 = vpop.f32.mrf.mxu1 }
0x16e4   :  { %v3289_v39 = vadd.f32 %v3287_v36, %v4590_v29  ;;  %4273 = vmatprep.subr.bf16.mxu0 %v4430_v0  ;;  %v3914_v29 = vld [vmem:[%s5164_s4 + $0x30] sm:$0xff] }
0x16e5   :  { %v3283_v40 = vpop.f32.mrf.mxu1  ;;  %v3081_v47 = vpack.c.bf16 %v3914_v29, %v3914_v29  ;;  %v3933_v29 = vld [vmem:[%s5166_s8 + $0x38] sm:$0xff] }
0x16e6   :  { %v3288_v41 = vmul.f32 0.35355338, %v3283_v40  ;;  %v3390_v42 = vpop.permute.xlu0 %3389  ;;  %v3291_v43 = vsel %vm154_vm2, %v3289_v39, -inf }
0x16e7   :  { %v4288_v44 = vpop.f32.mrf.mxu1  ;;  %3292 = vmax.xlane.f32.xlu1 %v3291_v43  ;;  %4295 = vmatpush3.msra.mxu1 %v3390_v42  ;;  %v3086_v48 = vsel %vm827_vm3, %v3081_v47, 0 }
0x16e8   :  { %v3290_v28 = vadd.f32 %v3288_v41, %v4593_v35  ;;  %4305 = vmatprep.subr.bf16.mxu1 %v4430_v0 }
0x16ea   :  { %v3294_v45 = vsel %vm154_vm2, %v3290_v28, -inf }
0x16eb   :  { %3295 = vmax.xlane.f32.xlu1 %v3294_v45 }
0x16ec   :  { %v4413_v15 = vpop.eup %4412 }
0x16ed   :  { %v2925_v46 = vmul.f32 %v4413_v15, %v4411_v33 }
0x16ef   :  { %4266 = vmatmul.mubr.msk.f32.vlgmr.msra.gmra.mxu0 %vm154_vm2, %v2925_v46 }
0x16f0   :  { %4275 = vmatprep.mubr.msk.bf16.mxu0 %vm4431_vm0, %v4430_v0  ;;  %4274 = vmatpush3.bf16.msra.mxu0 %v3086_v48  ;;  %v3930_v48 = vld [vmem:[%s5166_s8 + $0x20] sm:$0xff] }
0x16f1   :  { %4289 = vmatprep.subr.mxu0 %v4430_v0 }
0x1770   :  { %v3293_v35 = vpop.xlane.xlu1 %3292 }
0x1771   :  { %v3297_v49 = vsub.f32 %v3289_v39, %v3293_v35  ;;  %v3931_v35 = vld [vmem:[%s5166_s8 + $0x28] sm:$0xff] }
0x1773   :  { %v3299_v51 = vmul.f32 1.442695, %v3297_v49  ;;  %v3581_v49 = vpack.c.bf16 %v3931_v35, %v3930_v48  ;;  %v3754_v48 = vld [vmem:[%s5174_s14 + $0x18] sm:$0xff]  ;;  %v3753_v35 = vld [vmem:[%s5174_s14 + $0x10] sm:$0xff] }
0x1774   :  { %v3296_v53 = vpop.xlane.xlu1 %3295 }
0x1775   :  { %4414 = vpow2.f32 %v3299_v51  ;;  %v3298_v54 = vsub.f32 %v3290_v28, %v3296_v53  ;;  %v3943_v51 = vld [vmem:[%s5167_s10 + $0x70] sm:$0xff]  ;;  %v3944_v53 = vld [vmem:[%s5167_s10 + $0x78] sm:$0xff] }
0x1777   :  { %v3301_v55 = vmul.f32 1.442695, %v3298_v54  ;;  %v3650_v54 = vpack.c.bf16 %v3944_v53, %v3943_v51  ;;  %v3751_v51 = vld [vmem:[%s5174_s14] sm:$0xff]  ;;  %v21_v53 = vstv %s5175_s15 }
0x1778   :  { %22 = vst [vmem:[#allocation2] sm:$0x1] %v21_v53 }
0x1779   :  { %4416 = vpow2.f32 %v3301_v55 }
0x1782   :  { %v4415_v56 = vpop.eup %4414 }
0x1783   :  { %v3303_v57 = vsel %vm154_vm2, %v4415_v56, 0.0 }
0x1784   :  { %3304 = vadd.xlane.f32.xlu1 %v3303_v57 }
0x1786   :  { %v4417_v58 = vpop.eup %4416 }
0x1787   :  { %v3306_v59 = vsel %vm154_vm2, %v4417_v58, 0.0 }
0x1788   :  { %3307 = vadd.xlane.f32.xlu1 %v3306_v59 }
0x1799   :  { %3313 = vrot.lane.b32.xlu1 %v4869_v25, %s5188_s27 }
0x17af   :  { %v2999_v60 = vpop.f32.mrf.mxu0 }
0x17b0   :  { %v3080_v61 = vpack.c.bf16 %v3075_v9, %v2999_v60 }
0x17b1   :  { %v4267_v62 = vpop.f32.mrf.mxu0 }
0x17b2   :  { %4276 = vmatmul.mubr.msk.bf16.vlgmr.msra.gmra.mxu0 %vm154_vm2, %v3080_v61 }
0x17b3   :  { %4291 = vmatprep.mubr.msk.f32.mxu0 %vm4431_vm0, %v4430_v0 }
0x180d   :  { %v3305_v63 = vpop.xlane.xlu1 %3304 }
0x180e   :  { %4418 = vrcp.f32 %v3305_v63  ;;  %v3928_v63 = vld [vmem:[%s5168_s6 + $0x1] ss:$0 sm:$0xff] }
0x1811   :  { %v3308_v1 = vpop.xlane.xlu1 %3307 }
0x1812   :  { %4420 = vrcp.f32 %v3308_v1 }
0x1815   :  { %v3314_v2 = vpop.permute.xlu1 %3313 }
0x1816   :  { %4290 = vmatpush3.msra.mxu0 %v3314_v2 }
0x1817   :  { %4299 = vmatprep.subr.bf16.mxu0 %v4430_v0 }
0x181b   :  { %v4419_v3 = vpop.eup %4418 }
0x181c   :  { %v3311_v5 = vmul.f32 %v4419_v3, %v4415_v56 }
0x181e   :  { %4292 = vmatmul.mubr.msk.f32.vlgmr.msra.gmra.mxu0 %vm154_vm2, %v3311_v5  ;;  %v3929_v5 = vld [vmem:[%s5169_s7 + $0x1] ss:$0 sm:$0xff] }
0x181f   :  { %v4421_v25 = vpop.eup %4420  ;;  %4301 = vmatprep.mubr.msk.bf16.mxu0 %vm4431_vm0, %v4430_v0  ;;  %4300 = vmatpush3.bf16.msra.mxu0 %v3472_v12  ;;  %v3941_v12 = vld [vmem:[%s5167_s10 + $0x60] sm:$0xff] }
0x1820   :  { %v3312_v10 = vmul.f32 %v4421_v25, %v4417_v58  ;;  %4313 = vmatprep.subr.bf16.mxu0 %v4430_v0 }
0x1822   :  { %4297 = vmatmul.mubr.msk.f32.vlgmr.msra.gmra.mxu1 %vm154_vm2, %v3312_v10 }
0x1823   :  { %4309 = vmatprep.mubr.msk.bf16.mxu1 %vm4431_vm0, %v4430_v0 }
0x1872   :  { %v3122_v17 = vpop.f32.mrf.mxu0 }
0x1873   :  { %v3129_v18 = vadd.f32 %v3122_v17, %v2739_v16  ;;  %v3942_v16 = vld [vmem:[%s5167_s10 + $0x68] sm:$0xff] }
0x1874   :  { %v4277_v19 = vpop.f32.mrf.mxu0  ;;  %v3649_v17 = vpack.c.bf16 %v3942_v16, %v3941_v12 }
0x1875   :  { %v3940_v19 = vld [vmem:[%s5167_s10 + $0x58] sm:$0xff] }
0x1876   :  { %v3125_v23 = vpop.f32.mrf.mxu0 }
0x1877   :  { %v3130_v24 = vadd.f32 %v3125_v23, %v2742_v22  ;;  %v3937_v23 = vld [vmem:[%s5167_s10 + $0x40] sm:$0xff] }
0x1878   :  { %v4278_v26 = vpop.f32.mrf.mxu0 }
0x18de   :  { %v3385_v27 = vpop.f32.mrf.mxu0 }
0x18e0   :  { %v4293_v30 = vpop.f32.mrf.mxu0 }
0x18e2   :  { %v3461_v31 = vpop.f32.mrf.mxu1 }
0x18e3   :  { %v3466_v32 = vpack.c.bf16 %v3461_v31, %v3385_v27  ;;  %v3935_v27 = vld [vmem:[%s5170_s9 + $0x1] ss:$0 sm:$0xff] }
0x18e4   :  { %v4298_v33 = vpop.f32.mrf.mxu1 }
0x18e5   :  { %4302 = vmatmul.mubr.msk.bf16.vlgmr.msra.gmra.mxu0 %vm154_vm2, %v3466_v32 }
0x18e6   :  { %4321 = vmatprep.mubr.msk.bf16.mxu0 %vm4431_vm0, %v4430_v0  ;;  %4314 = vmatpush3.bf16.msra.mxu0 %v3650_v54 }
0x18e7   :  { %4315 = vmatprep.subr.bf16.mxu0 %v4430_v0 }
0x18ea   :  { %4316 = vmatpush3.bf16.msra.mxu0 %v3649_v17 }
0x18eb   :  { %4317 = vmatprep.subr.bf16.mxu0 %v4430_v0 }
0x19a5   :  { %v3508_v7 = vpop.f32.mrf.mxu0 }
0x19a6   :  { %v3515_v50 = vadd.f32 %v3508_v7, %v3129_v18  ;;  %v3939_v18 = vld [vmem:[%s5167_s10 + $0x50] sm:$0xff] }
0x19a7   :  { %v4303_v8 = vpop.f32.mrf.mxu0  ;;  %v3648_v22 = vpack.c.bf16 %v3940_v19, %v3939_v18 }
0x19a8   :  { %v3525_v6 = vadd.f32 %v3925_v4, %v3515_v50 }
0x19a9   :  { %v3511_v9 = vpop.f32.mrf.mxu0  ;;  %4318 = vmatpush3.bf16.msra.mxu0 %v3648_v22 }
0x19aa   :  { %v3516_v34 = vadd.f32 %v3511_v9, %v3130_v24  ;;  %v3527_v52 = vadd.f32 %v3525_v6, %v4857_v20  ;;  %4319 = vmatprep.subr.bf16.mxu0 %v4430_v0  ;;  %v3938_v24 = vld [vmem:[%s5167_s10 + $0x48] sm:$0xff] }
0x19ab   :  { %v4304_v11 = vpop.f32.mrf.mxu0  ;;  %v3647_v26 = vpack.c.bf16 %v3938_v24, %v3937_v23 }
0x19ac   :  { %v3526_v36 = vadd.f32 %v3925_v4, %v3516_v34  ;;  %v3533_v37 = vsel %vm106_vm1, %v3527_v52, 0.0  ;;  %v3946_v34 = vld [vmem:[%s5171_s11 + $0x1] ss:$0 sm:$0xff] }
0x19ad   :  { %3534 = vadd.xlane.f32.xlu0 %v3533_v37  ;;  %4320 = vmatpush3.bf16.msra.mxu0 %v3647_v26 }
0x19ae   :  { %v3528_v38 = vadd.f32 %v3526_v36, %v4859_v21  ;;  %v3932_v21 = vld [vmem:[%s5166_s8 + $0x30] sm:$0xff] }
0x19af   :  { %v3582_v47 = vpack.c.bf16 %v3933_v29, %v3932_v21 }
0x19b0   :  { %v3536_v39 = vsel %vm106_vm1, %v3528_v38, 0.0 }
0x19b1   :  { %3537 = vadd.xlane.f32.xlu1 %v3536_v39  ;;  %4306 = vmatpush3.bf16.msra.mxu1 %v3582_v47 }
0x19b2   :  { %4307 = vmatprep.subr.bf16.mxu1 %v4430_v0 }
0x19b5   :  { %4308 = vmatpush3.bf16.msra.mxu1 %v3581_v49  ;;  %v3752_v49 = vld [vmem:[%s5174_s14 + $0x8] sm:$0xff] }
0x19b6   :  { %4325 = vmatprep.subr.mxu1 %v4430_v0 }
0x1a36   :  { %v3535_v40 = vpop.xlane.xlu0 %3534 }
0x1a37   :  { %v3539_v41 = vmul.f32 0.03125, %v3535_v40 }
0x1a39   :  { %v3541_v42 = vsub.f32 %v3527_v52, %v3539_v41 }
0x1a3a   :  { %v3538_v43 = vpop.xlane.xlu1 %3537 }
0x1a3b   :  { %v3540_v44 = vmul.f32 0.03125, %v3538_v43  ;;  %v3543_v28 = vmul.f32 %v3541_v42, %v3541_v42 }
0x1a3d   :  { %v3542_v45 = vsub.f32 %v3528_v38, %v3540_v44  ;;  %v3545_v15 = vsel %vm106_vm1, %v3543_v28, 0.0 }
0x1a3e   :  { %3546 = vadd.xlane.f32.xlu0 %v3545_v15 }
0x1a3f   :  { %v3544_v20 = vmul.f32 %v3542_v45, %v3542_v45 }
0x1a41   :  { %v3548_v46 = vsel %vm106_vm1, %v3544_v20, 0.0 }
0x1a42   :  { %3549 = vadd.xlane.f32.xlu0 %v3548_v46 }
0x1ac7   :  { %v3547_v55 = vpop.xlane.xlu0 %3546 }
0x1ac8   :  { %v3551_v56 = vmul.f32 0.03125, %v3547_v55 }
0x1aca   :  { %v3553_v57 = vadd.f32 1e-05, %v3551_v56 }
0x1acb   :  { %v3550_v58 = vpop.xlane.xlu0 %3549 }
0x1acc   :  { %4422 = vrsqrt.f32 %v3553_v57  ;;  %v3552_v59 = vmul.f32 0.03125, %v3550_v58 }
0x1ace   :  { %v3554_v60 = vadd.f32 1e-05, %v3552_v59 }
0x1ad0   :  { %4424 = vrsqrt.f32 %v3554_v60 }
0x1ad9   :  { %v4423_v61 = vpop.eup %4422 }
0x1ada   :  { %v3557_v62 = vmul.f32 %v4423_v61, %v3541_v42  ;;  %v3950_v61 = vld [vmem:[%s5172_s12 + $0x1] ss:$0 sm:$0xff] }
0x1adc   :  { %v3565_v3 = vmul.f32 %v3928_v63, %v3557_v62  ;;  %v3951_v62 = vld [vmem:[%s5173_s13 + $0x1] ss:$0 sm:$0xff] }
0x1add   :  { %v4425_v1 = vpop.eup %4424 }
0x1ade   :  { %v3558_v2 = vmul.f32 %v4425_v1, %v3542_v45  ;;  %v3573_v10 = vadd.f32 %v3929_v5, %v3565_v3 }
0x1ae0   :  { %v3566_v25 = vmul.f32 %v3928_v63, %v3558_v2 }
0x1ae2   :  { %v3574_v13 = vadd.f32 %v3929_v5, %v3566_v25 }
0x1ae4   :  { %v3580_v14 = vpack.c.bf16 %v3574_v13, %v3573_v10 }
0x1ae6   :  { %4310 = vmatmul.mubr.msk.bf16.vlgmr.msra.gmra.mxu1 %vm106_vm1, %v3580_v14  ;;  %v3952_v14 = vld [vmem:[#allocation2] ss:$0 sm:$0xff] }
0x1ae7   :  { %4333 = vmatprep.mubr.msk.f32.mxu1 %vm4431_vm0, %v4430_v0  ;;  %4326 = vmatpush3.msra.mxu1 %v3754_v48 }
0x1ae8   :  { %4327 = vmatprep.subr.mxu1 %v4430_v0 }
0x1ae9   :  { %4328 = vmatpush3.msra.mxu1 %v3753_v35 }
0x1aea   :  { %4329 = vmatprep.subr.mxu1 %v4430_v0 }
0x1aeb   :  { %4330 = vmatpush3.msra.mxu1 %v3752_v49 }
0x1aec   :  { %4331 = vmatprep.subr.mxu1 %v4430_v0 }
0x1aed   :  { %4332 = vmatpush3.msra.mxu1 %v3751_v51 }
0x1ba6   :  { %v3628_v30 = vpop.f32.mrf.mxu1 }
0x1ba7   :  { %v3629_v32 = vadd.f32 %v3935_v27, %v3628_v30 }
0x1ba8   :  { %v4311_v31 = vpop.f32.mrf.mxu1 }
0x1ba9   :  { %v3635_v50 = vmax.f32 %v3629_v32, 0.0 }
0x1baa   :  { %v3631_v33 = vpop.f32.mrf.mxu1 }
0x1bab   :  { %v3632_v7 = vadd.f32 %v3935_v27, %v3631_v33 }
0x1bac   :  { %v4312_v4 = vpop.f32.mrf.mxu1 }
0x1bad   :  { %v3636_v8 = vmax.f32 %v3632_v7, 0.0 }
0x1baf   :  { %v3646_v6 = vpack.c.bf16 %v3636_v8, %v3635_v50 }
0x1bb1   :  { %4322 = vmatmul.mubr.msk.bf16.vlgmr.msra.gmra.mxu0 %vm1827_vm4, %v3646_v6 }
0x1c71   :  { %v3696_v9 = vpop.f32.mrf.mxu0 }
0x1c72   :  { %v3697_v36 = vadd.f32 %v3946_v34, %v3696_v9 }
0x1c73   :  { %v4323_v52 = vpop.f32.mrf.mxu0 }
0x1c74   :  { %v3703_v41 = vadd.f32 %v3697_v36, %v3573_v10 }
0x1c75   :  { %v3699_v11 = vpop.f32.mrf.mxu0 }
0x1c76   :  { %v3700_v37 = vadd.f32 %v3946_v34, %v3699_v11  ;;  %v3709_v42 = vsel %vm106_vm1, %v3703_v41, 0.0 }
0x1c77   :  { %v4324_v38 = vpop.f32.mrf.mxu0 }
0x1c78   :  { %v3704_v39 = vadd.f32 %v3700_v37, %v3574_v13 }
0x1c7a   :  { %v3712_v40 = vsel %vm106_vm1, %v3704_v39, 0.0 }
0x1c7b   :  { %3713 = vadd.xlane.f32.xlu0 %v3712_v40 }
0x1c7f   :  { %3710 = vadd.xlane.f32.xlu0 %v3709_v42 }
0x1d04   :  { %v3714_v43 = vpop.xlane.xlu0 %3713 }
0x1d05   :  { %v3716_v44 = vmul.f32 0.03125, %v3714_v43 }
0x1d07   :  { %v3718_v28 = vsub.f32 %v3704_v39, %v3716_v44 }
0x1d08   :  { %v3711_v45 = vpop.xlane.xlu0 %3710 }
0x1d09   :  { %v3715_v15 = vmul.f32 0.03125, %v3711_v45  ;;  %v3720_v20 = vmul.f32 %v3718_v28, %v3718_v28 }
0x1d0b   :  { %v3717_v46 = vsub.f32 %v3703_v41, %v3715_v15  ;;  %v3724_v21 = vsel %vm106_vm1, %v3720_v20, 0.0 }
0x1d0c   :  { %3725 = vadd.xlane.f32.xlu1 %v3724_v21 }
0x1d0d   :  { %v3719_v29 = vmul.f32 %v3717_v46, %v3717_v46 }
0x1d0f   :  { %v3721_v47 = vsel %vm106_vm1, %v3719_v29, 0.0 }
0x1d10   :  { %3722 = vadd.xlane.f32.xlu0 %v3721_v47 }
0x1d95   :  { %v3726_v54 = vpop.xlane.xlu1 %3725 }
0x1d96   :  { %v3728_v55 = vmul.f32 0.03125, %v3726_v54 }
0x1d98   :  { %v3730_v56 = vadd.f32 1e-05, %v3728_v55 }
0x1d99   :  { %v3723_v57 = vpop.xlane.xlu0 %3722 }
0x1d9a   :  { %4426 = vrsqrt.f32 %v3730_v56  ;;  %v3727_v58 = vmul.f32 0.03125, %v3723_v57 }
0x1d9c   :  { %v3729_v59 = vadd.f32 1e-05, %v3727_v58 }
0x1d9e   :  { %4428 = vrsqrt.f32 %v3729_v59 }
0x1da7   :  { %v4427_v60 = vpop.eup %4426 }
0x1da8   :  { %v3734_v0 = vmul.f32 %v4427_v60, %v3718_v28 }
0x1daa   :  { %v3742_v63 = vmul.f32 %v3950_v61, %v3734_v0 }
0x1dab   :  { %v4429_v1 = vpop.eup %4428 }
0x1dac   :  { %v3733_v2 = vmul.f32 %v4429_v1, %v3717_v46  ;;  %v3750_v3 = vadd.f32 %v3951_v62, %v3742_v63 }
0x1dae   :  { %v3741_v5 = vmul.f32 %v3950_v61, %v3733_v2  ;;  %v3764_v10 = vrot.slane %v3750_v3, 7 }
0x1db0   :  { %v3749_v25 = vadd.f32 %v3951_v62, %v3741_v5 }
0x1db2   :  { %v3766_v13 = vsel %vm3765_vm5, %v3764_v10, %v3749_v25 }
0x1db3   :  { %4334 = vmatmul.mubr.msk.f32.vlgmr.msra.gmra.mxu1 %vm106_vm1, %v3766_v13 }
0x1e73   :  { %v3835_v12 = vpop.f32.mrf.mxu1 }
0x1e74   :  { %v3836_v16 = vadd.f32 %v3952_v14, %v3835_v12 }
0x1e75   :  { %v4335_v17 = vpop.f32.mrf.mxu1 }
0x1e76   :  { %3840 = vst.msk [vmem:[%s5176_s16] sm:$0x3] %vm3839_vm6, %v3836_v16 }

</bundles_post_ra>
